<compile_context>
chip_gen: v7x
topology: tpu7x:2x2x1
jax: 0.10.0
libtpu: 0.0.40
codegen_flags: <defaults>
</compile_context>

<pallas_src>
import functools

import jax
import jax.numpy as jnp
from jax import lax
from jax.experimental import pallas as pl
from jax.experimental.pallas import tpu as pltpu


def _linear_attention_kernel(x_ref, mask_ref, wq_ref, wk_ref, wv_ref, wo_ref,
                             b_ref, gamma_ref, beta_ref, o_ref,
                             *, heads, dim_head, scale, eps, compute_dtype):
    f32 = jnp.float32
    cdt = compute_dtype
    use_approx = cdt != jnp.float32          # EUP reciprocal on the bf16 path

    x = x_ref[0].astype(cdt)                 # (C, N)  N on lanes (lane-dense)
    mask = mask_ref[...]                     # (hidden, hidden) block-diag 0/1

    # ---- k path: (hidden, C) @ (C, N) -> (hidden, N); softmax over N (lanes)
    k = jnp.dot(wk_ref[...], x, preferred_element_type=f32)
    k = k - jnp.max(k, axis=1, keepdims=True)
    ek = jnp.exp(k)
    ksum = jnp.sum(ek, axis=1, keepdims=True)
    kinv = pl.reciprocal(ksum, approx=True) if use_approx else 1.0 / ksum
    k_s = (ek * kinv).astype(cdt)                                # (hidden, N)

    # ---- v path -------------------------------------------------------------
    v = jnp.dot(wv_ref[...], x, preferred_element_type=f32).astype(cdt)

    # ---- context = K @ V^T, masked to block-diagonal (per-head) blocks ------
    # ctx[d, e] = sum_n k[d, n] * v[e, n]
    ctx = lax.dot_general(k_s, v, (((1,), (1,)), ((), ())),
                          preferred_element_type=f32)            # (hidden, hidden)
    ctx = (ctx * mask.astype(f32)).astype(cdt)   # mask BEFORE mixing with W_out

    # ---- fold the 1x1 output conv into the context:
    # W2[c, d] = sum_e W_out[c, e] * ctx[d, e]    -> y = W2 @ q_softmax
    w2 = lax.dot_general(wo_ref[...], ctx, (((1,), (1,)), ((), ())),
                         preferred_element_type=f32).astype(cdt)  # (C, hidden)

    # ---- q path: softmax over dim_head (sublane blocks) ---------------------
    q = jnp.dot(wq_ref[...], x, preferred_element_type=f32)      # (hidden, N)
    # Subtracting the per-column max over ALL rows is softmax-invariant
    # (constant over each head's reduction axis) and avoids segmented maxes.
    q = q - jnp.max(q, axis=0, keepdims=True)
    eq = jnp.exp(q)
    # Per-head segment sums via the block-diagonal ones mask on the MXU;
    # result is already broadcast back to (hidden, N).
    denom = jnp.dot(mask, eq.astype(cdt), preferred_element_type=f32)
    qinv = pl.reciprocal(denom, approx=True) if use_approx else 1.0 / denom
    q_s = (eq * qinv * scale).astype(cdt)                        # (hidden, N)

    # ---- attention output + 1x1 conv bias -----------------------------------
    y = jnp.dot(w2, q_s, preferred_element_type=f32) + b_ref[...]   # (C, N)

    # ---- GroupNorm(1, dim): single-pass stats over the whole sample ---------
    cnt = y.shape[0] * y.shape[1]
    s1 = jnp.sum(y)
    s2 = jnp.sum(y * y)
    mean = s1 / cnt
    var = s2 / cnt - mean * mean
    y = (y - mean) * lax.rsqrt(var + eps)
    y = y * gamma_ref[...] + beta_ref[...]

    o_ref[0] = y.astype(o_ref.dtype)


def linear_attention(x, params, *, heads, dim_head,
                     compute_dtype=jnp.bfloat16):
    """x: (B, C, H, W) f32 -> (B, C, H, W) f32.  Matches LinearAttention.forward."""
    B, C, H, W = x.shape
    N = H * W
    hidden = heads * dim_head
    scale = dim_head ** (-0.5)
    eps = 1e-5

    # Torch conv-weight layouts -> matmul form for the channels-first kernel.
    w_qkv = params["w_qkv"]                                   # (3*hidden, C)
    w_q = w_qkv[0 * hidden:1 * hidden].astype(compute_dtype)  # (hidden, C)
    w_k = w_qkv[1 * hidden:2 * hidden].astype(compute_dtype)
    w_v = w_qkv[2 * hidden:3 * hidden].astype(compute_dtype)
    w_o = params["w_out"].astype(compute_dtype)               # (C, hidden)
    b_o = params["b_out"].reshape(C, 1).astype(jnp.float32)
    gamma = params["gamma"].reshape(C, 1).astype(jnp.float32)
    beta = params["beta"].reshape(C, 1).astype(jnp.float32)

    # Precomputed block-diagonal head mask (hidden x hidden).
    head_ids = jnp.arange(hidden, dtype=jnp.int32) // dim_head
    mask = (head_ids[:, None] == head_ids[None, :]).astype(compute_dtype)

    # Native (B, C, N) layout — free reshape, no transpose passes.
    x_flat = x.reshape(B, C, N)

    kernel = functools.partial(_linear_attention_kernel,
                               heads=heads, dim_head=dim_head,
                               scale=scale, eps=eps,
                               compute_dtype=compute_dtype)

    out_flat = pl.pallas_call(
        kernel,
        out_shape=jax.ShapeDtypeStruct((B, C, N), jnp.float32),
        grid_spec=pltpu.PrefetchScalarGridSpec(
            num_scalar_prefetch=0,
            grid=(B,),                       # even "parallel" steps -> both v7x TCs
            in_specs=[
                pl.BlockSpec((1, C, N), lambda b: (b, 0, 0)),      # x
                pl.BlockSpec((hidden, hidden), lambda b: (0, 0)),  # head mask
                pl.BlockSpec((hidden, C), lambda b: (0, 0)),       # w_q
                pl.BlockSpec((hidden, C), lambda b: (0, 0)),       # w_k
                pl.BlockSpec((hidden, C), lambda b: (0, 0)),       # w_v
                pl.BlockSpec((C, hidden), lambda b: (0, 0)),       # w_out
                pl.BlockSpec((C, 1), lambda b: (0, 0)),            # b_out
                pl.BlockSpec((C, 1), lambda b: (0, 0)),            # gamma
                pl.BlockSpec((C, 1), lambda b: (0, 0)),            # beta
            ],
            out_specs=pl.BlockSpec((1, C, N), lambda b: (b, 0, 0)),
        ),
        compiler_params=pltpu.CompilerParams(
            dimension_semantics=("parallel",),
            vmem_limit_bytes=32 * 1024 * 1024),
    )(x_flat, mask, w_q, w_k, w_v, w_o, b_o, gamma, beta)

    return out_flat.reshape(B, C, H, W)


def linear_attention_ref(x, params, *, heads, dim_head):
    """Pure-JAX f32 reference mirroring the PyTorch forward exactly."""
    B, C, H, W = x.shape
    N = H * W
    hidden = heads * dim_head
    scale = dim_head ** (-0.5)
    hp = jax.lax.Precision.HIGHEST

    xf = x.reshape(B, C, N).astype(jnp.float32)
    qkv = jnp.einsum('oc,bcn->bon', params["w_qkv"], xf, precision=hp)
    q, k, v = jnp.split(qkv, 3, axis=1)
    rs = lambda t: t.reshape(B, heads, dim_head, N)
    q, k, v = rs(q), rs(k), rs(v)
    q = jax.nn.softmax(q, axis=-2) * scale
    k = jax.nn.softmax(k, axis=-1)
    context = jnp.einsum('bhdn,bhen->bhde', k, v, precision=hp)
    out = jnp.einsum('bhde,bhdn->bhen', context, q, precision=hp)
    out = out.reshape(B, hidden, N)
    y = jnp.einsum('ce,ben->bcn', params["w_out"], out, precision=hp)
    y = y + params["b_out"][None, :, None]
    mean = jnp.mean(y, axis=(1, 2), keepdims=True)
    var = jnp.mean((y - mean) ** 2, axis=(1, 2), keepdims=True)
    y = (y - mean) / jnp.sqrt(var + 1e-5)
    y = y * params["gamma"][None, :, None] + params["beta"][None, :, None]
    return y.reshape(B, C, H, W)


if __name__ == "__main__":
    B, DIM, H, W = 2, 8, 16, 16
    HEADS, DIM_HEAD = 4, 32
    HIDDEN = HEADS * DIM_HEAD

    key = jax.random.PRNGKey(0)
    kx, k1, k2, k3, k4, k5 = jax.random.split(key, 6)

    x = jax.random.normal(kx, (B, DIM, H, W), dtype=jnp.float32)

    # Parameters in the torch Conv2d / GroupNorm layouts (1x1 kernels squeezed).
    params = {
        "w_qkv": 0.1 * jax.random.normal(k1, (3 * HIDDEN, DIM), dtype=jnp.float32),
        "w_out": 0.1 * jax.random.normal(k2, (DIM, HIDDEN), dtype=jnp.float32),
        "b_out": 0.05 * jax.random.normal(k3, (DIM,), dtype=jnp.float32),
        "gamma": 1.0 + 0.1 * jax.random.normal(k4, (DIM,), dtype=jnp.float32),
        "beta": 0.1 * jax.random.normal(k5, (DIM,), dtype=jnp.float32),
    }

    ref = linear_attention_ref(x, params, heads=HEADS, dim_head=DIM_HEAD)

    # 1) f32 compute path: tight check that the packed / fused formulation
    #    (block-diag masked context, folded output conv) matches the module.
    out_f32 = jax.block_until_ready(
        linear_attention(x, params, heads=HEADS, dim_head=DIM_HEAD,
                         compute_dtype=jnp.float32))
    assert out_f32.shape == (B, DIM, H, W)
    err32 = float(jnp.max(jnp.abs(out_f32 - ref)))
    assert jnp.allclose(out_f32, ref, atol=5e-3, rtol=5e-3), \
        f"f32 path max abs err {err32}"

    # 2) default bf16-MXU path (f32 accumulation, f32 softmax / GroupNorm).
    out_bf16 = jax.block_until_ready(
        linear_attention(x, params, heads=HEADS, dim_head=DIM_HEAD))
    assert out_bf16.shape == (B, DIM, H, W)
    err16 = float(jnp.max(jnp.abs(out_bf16 - ref)))
    assert jnp.allclose(out_bf16, ref, atol=5e-2, rtol=5e-2), \
        f"bf16 path max abs err {err16}"

    print("KERNEL_OK")
</pallas_src>

<mosaic_0001>
module attributes {stable_mosaic.version = 11 : i64} {
  func.func @_linear_attention_kernel(%arg0: i32, %arg1: memref<1x8x256xf32, #tpu.memory_space<vmem>>, %arg2: memref<128x128xf32, #tpu.memory_space<vmem>>, %arg3: memref<128x8xf32, #tpu.memory_space<vmem>>, %arg4: memref<128x8xf32, #tpu.memory_space<vmem>>, %arg5: memref<128x8xf32, #tpu.memory_space<vmem>>, %arg6: memref<8x128xf32, #tpu.memory_space<vmem>>, %arg7: memref<8x1xf32, #tpu.memory_space<vmem>>, %arg8: memref<8x1xf32, #tpu.memory_space<vmem>>, %arg9: memref<8x1xf32, #tpu.memory_space<vmem>>, %arg10: memref<1x8x256xf32, #tpu.memory_space<vmem>>) attributes {dimension_semantics = [#tpu.dimension_semantics<parallel>], iteration_bounds = array<i64: 2>, scalar_prefetch = 0 : i64, scratch_operands = 0 : i64, tpu.core_type = #tpu.core_type<tc>, window_params = [{transform_indices = @transform_0, window_bounds = array<i64: 1, 8, 256>}, {pipeline_mode = #tpu.pipeline_mode<synchronous>, transform_indices = @transform_1, window_bounds = array<i64: 128, 128>}, {pipeline_mode = #tpu.pipeline_mode<synchronous>, transform_indices = @transform_2, window_bounds = array<i64: 128, 8>}, {pipeline_mode = #tpu.pipeline_mode<synchronous>, transform_indices = @transform_3, window_bounds = array<i64: 128, 8>}, {pipeline_mode = #tpu.pipeline_mode<synchronous>, transform_indices = @transform_4, window_bounds = array<i64: 128, 8>}, {pipeline_mode = #tpu.pipeline_mode<synchronous>, transform_indices = @transform_5, window_bounds = array<i64: 8, 128>}, {pipeline_mode = #tpu.pipeline_mode<synchronous>, transform_indices = @transform_6, window_bounds = array<i64: 8, 1>}, {pipeline_mode = #tpu.pipeline_mode<synchronous>, transform_indices = @transform_7, window_bounds = array<i64: 8, 1>}, {pipeline_mode = #tpu.pipeline_mode<synchronous>, transform_indices = @transform_8, window_bounds = array<i64: 8, 1>}, {transform_indices = @transform_9, window_bounds = array<i64: 1, 8, 256>}]} {
    %c0 = arith.constant 0 : index
    %c0_0 = arith.constant 0 : index
    %c0_1 = arith.constant 0 : index
    %0 = vector.load %arg1[%c0, %c0_0, %c0_1] : memref<1x8x256xf32, #tpu.memory_space<vmem>>, vector<1x8x256xf32>
    %1 = vector.shape_cast %0 : vector<1x8x256xf32> to vector<8x256xf32>
    %c0_2 = arith.constant 0 : index
    %c0_3 = arith.constant 0 : index
    %2 = vector.load %arg2[%c0_2, %c0_3] : memref<128x128xf32, #tpu.memory_space<vmem>>, vector<128x128xf32>
    %c0_4 = arith.constant 0 : index
    %c0_5 = arith.constant 0 : index
    %3 = vector.load %arg4[%c0_4, %c0_5] : memref<128x8xf32, #tpu.memory_space<vmem>>, vector<128x8xf32>
    %cst = arith.constant dense<0.000000e+00> : vector<128x256xf32>
    %4 = tpu.matmul %3, %1, %cst {dimension_numbers = #tpu.dot_dimension_numbers<[1], [0], [0], [1], [0, 0, 1, 1], [], []>} : vector<128x8xf32>, vector<8x256xf32>, vector<128x256xf32> -> vector<128x256xf32>
    %cst_6 = arith.constant dense<0xFF800000> : vector<128xf32>
    %5 = vector.multi_reduction <maximumf>, %4, %cst_6 [1] : vector<128x256xf32> to vector<128xf32>
    %6 = vector.shape_cast %5 : vector<128xf32> to vector<128x1xf32>
    %7 = vector.broadcast %6 : vector<128x1xf32> to vector<128x256xf32>
    %8 = arith.subf %4, %7 : vector<128x256xf32>
    %9 = math.exp %8 : vector<128x256xf32>
    %cst_7 = arith.constant dense<0.000000e+00> : vector<128xf32>
    %10 = vector.multi_reduction <add>, %9, %cst_7 [1] : vector<128x256xf32> to vector<128xf32>
    %11 = vector.shape_cast %10 : vector<128xf32> to vector<128x1xf32>
    %cst_8 = arith.constant 1.000000e+00 : f32
    %12 = vector.broadcast %cst_8 : f32 to vector<128x1xf32>
    %13 = arith.divf %12, %11 : vector<128x1xf32>
    %14 = vector.broadcast %13 : vector<128x1xf32> to vector<128x256xf32>
    %15 = arith.mulf %9, %14 : vector<128x256xf32>
    %c0_9 = arith.constant 0 : index
    %c0_10 = arith.constant 0 : index
    %16 = vector.load %arg5[%c0_9, %c0_10] : memref<128x8xf32, #tpu.memory_space<vmem>>, vector<128x8xf32>
    %cst_11 = arith.constant dense<0.000000e+00> : vector<128x256xf32>
    %17 = tpu.matmul %16, %1, %cst_11 {dimension_numbers = #tpu.dot_dimension_numbers<[1], [0], [0], [1], [0, 0, 1, 1], [], []>} : vector<128x8xf32>, vector<8x256xf32>, vector<128x256xf32> -> vector<128x256xf32>
    %cst_12 = arith.constant dense<0.000000e+00> : vector<128x128xf32>
    %18 = tpu.matmul %15, %17, %cst_12 {dimension_numbers = #tpu.dot_dimension_numbers<[1], [1], [0], [0], [0, 0, 1, 0], [], []>} : vector<128x256xf32>, vector<128x256xf32>, vector<128x128xf32> -> vector<128x128xf32>
    %19 = arith.mulf %18, %2 : vector<128x128xf32>
    %c0_13 = arith.constant 0 : index
    %c0_14 = arith.constant 0 : index
    %20 = vector.load %arg6[%c0_13, %c0_14] : memref<8x128xf32, #tpu.memory_space<vmem>>, vector<8x128xf32>
    %cst_15 = arith.constant dense<0.000000e+00> : vector<8x128xf32>
    %21 = tpu.matmul %20, %19, %cst_15 {dimension_numbers = #tpu.dot_dimension_numbers<[1], [1], [0], [0], [0, 0, 1, 0], [], []>} : vector<8x128xf32>, vector<128x128xf32>, vector<8x128xf32> -> vector<8x128xf32>
    %c0_16 = arith.constant 0 : index
    %c0_17 = arith.constant 0 : index
    %22 = vector.load %arg3[%c0_16, %c0_17] : memref<128x8xf32, #tpu.memory_space<vmem>>, vector<128x8xf32>
    %cst_18 = arith.constant dense<0.000000e+00> : vector<128x256xf32>
    %23 = tpu.matmul %22, %1, %cst_18 {dimension_numbers = #tpu.dot_dimension_numbers<[1], [0], [0], [1], [0, 0, 1, 1], [], []>} : vector<128x8xf32>, vector<8x256xf32>, vector<128x256xf32> -> vector<128x256xf32>
    %cst_19 = arith.constant dense<0xFF800000> : vector<256xf32>
    %24 = vector.multi_reduction <maximumf>, %23, %cst_19 [0] : vector<128x256xf32> to vector<256xf32>
    %25 = vector.shape_cast %24 : vector<256xf32> to vector<1x256xf32>
    %26 = vector.broadcast %25 : vector<1x256xf32> to vector<128x256xf32>
    %27 = arith.subf %23, %26 : vector<128x256xf32>
    %28 = math.exp %27 : vector<128x256xf32>
    %cst_20 = arith.constant dense<0.000000e+00> : vector<128x256xf32>
    %29 = tpu.matmul %2, %28, %cst_20 {dimension_numbers = #tpu.dot_dimension_numbers<[1], [0], [0], [1], [0, 0, 1, 1], [], []>} : vector<128x128xf32>, vector<128x256xf32>, vector<128x256xf32> -> vector<128x256xf32>
    %cst_21 = arith.constant 1.000000e+00 : f32
    %30 = vector.broadcast %cst_21 : f32 to vector<128x256xf32>
    %31 = arith.divf %30, %29 : vector<128x256xf32>
    %32 = arith.mulf %28, %31 : vector<128x256xf32>
    %cst_22 = arith.constant 0.176776692 : f32
    %33 = vector.broadcast %cst_22 : f32 to vector<128x256xf32>
    %34 = arith.mulf %32, %33 : vector<128x256xf32>
    %cst_23 = arith.constant dense<0.000000e+00> : vector<8x256xf32>
    %35 = tpu.matmul %21, %34, %cst_23 {dimension_numbers = #tpu.dot_dimension_numbers<[1], [0], [0], [1], [0, 0, 1, 1], [], []>} : vector<8x128xf32>, vector<128x256xf32>, vector<8x256xf32> -> vector<8x256xf32>
    %c0_24 = arith.constant 0 : index
    %c0_25 = arith.constant 0 : index
    %36 = vector.load %arg7[%c0_24, %c0_25] : memref<8x1xf32, #tpu.memory_space<vmem>>, vector<8x1xf32>
    %37 = vector.broadcast %36 : vector<8x1xf32> to vector<8x256xf32>
    %38 = arith.addf %35, %37 : vector<8x256xf32>
    %39 = vector.shape_cast %38 : vector<8x256xf32> to vector<1x8x256xf32>
    %cst_26 = arith.constant dense<0.000000e+00> : vector<1xf32>
    %40 = vector.multi_reduction <add>, %39, %cst_26 [1, 2] : vector<1x8x256xf32> to vector<1xf32>
    %41 = vector.shape_cast %40 : vector<1xf32> to vector<1x1x1xf32>
    %42 = vector.extract %41[0, 0, 0] : f32 from vector<1x1x1xf32>
    %43 = arith.mulf %38, %38 : vector<8x256xf32>
    %44 = vector.shape_cast %43 : vector<8x256xf32> to vector<1x8x256xf32>
    %cst_27 = arith.constant dense<0.000000e+00> : vector<1xf32>
    %45 = vector.multi_reduction <add>, %44, %cst_27 [1, 2] : vector<1x8x256xf32> to vector<1xf32>
    %46 = vector.shape_cast %45 : vector<1xf32> to vector<1x1x1xf32>
    %47 = vector.extract %46[0, 0, 0] : f32 from vector<1x1x1xf32>
    %cst_28 = arith.constant 2.048000e+03 : f32
    %48 = arith.divf %42, %cst_28 : f32
    %cst_29 = arith.constant 2.048000e+03 : f32
    %49 = arith.divf %47, %cst_29 : f32
    %50 = arith.mulf %48, %48 : f32
    %51 = arith.subf %49, %50 : f32
    %52 = vector.broadcast %48 : f32 to vector<8x256xf32>
    %53 = arith.subf %38, %52 : vector<8x256xf32>
    %cst_30 = arith.constant 9.99999974E-6 : f32
    %54 = arith.addf %51, %cst_30 : f32
    %55 = math.rsqrt %54 : f32
    %56 = vector.broadcast %55 : f32 to vector<8x256xf32>
    %57 = arith.mulf %53, %56 : vector<8x256xf32>
    %c0_31 = arith.constant 0 : index
    %c0_32 = arith.constant 0 : index
    %58 = vector.load %arg8[%c0_31, %c0_32] : memref<8x1xf32, #tpu.memory_space<vmem>>, vector<8x1xf32>
    %59 = vector.broadcast %58 : vector<8x1xf32> to vector<8x256xf32>
    %60 = arith.mulf %57, %59 : vector<8x256xf32>
    %c0_33 = arith.constant 0 : index
    %c0_34 = arith.constant 0 : index
    %61 = vector.load %arg9[%c0_33, %c0_34] : memref<8x1xf32, #tpu.memory_space<vmem>>, vector<8x1xf32>
    %62 = vector.broadcast %61 : vector<8x1xf32> to vector<8x256xf32>
    %63 = arith.addf %60, %62 : vector<8x256xf32>
    %c0_35 = arith.constant 0 : index
    %c0_36 = arith.constant 0 : index
    %c0_37 = arith.constant 0 : index
    %64 = vector.load %arg10[%c0_35, %c0_36, %c0_37] : memref<1x8x256xf32, #tpu.memory_space<vmem>>, vector<1x8x256xf32>
    %65 = vector.shape_cast %64 : vector<1x8x256xf32> to vector<8x256xf32>
    %66 = vector.shape_cast %63 : vector<8x256xf32> to vector<1x8x256xf32>
    tpu.vector_store %arg10[%c0_35, %c0_36, %c0_37], %66 {strides = array<i32>} : memref<1x8x256xf32, #tpu.memory_space<vmem>>, vector<1x8x256xf32>,
    return
  }
  func.func @transform_0(%arg0: i32) -> (i32, i32, i32) {
    %c0_i32 = arith.constant 0 : i32
    %c0_i32_0 = arith.constant 0 : i32
    %c0_i32_1 = arith.constant 0 : i32
    return %arg0, %c0_i32, %c0_i32_0 : i32, i32, i32
  }
  func.func @transform_1(%arg0: i32) -> (i32, i32) {
    %c0_i32 = arith.constant 0 : i32
    %c0_i32_0 = arith.constant 0 : i32
    %c0_i32_1 = arith.constant 0 : i32
    return %c0_i32, %c0_i32_0 : i32, i32
  }
  func.func @transform_2(%arg0: i32) -> (i32, i32) {
    %c0_i32 = arith.constant 0 : i32
    %c0_i32_0 = arith.constant 0 : i32
    %c0_i32_1 = arith.constant 0 : i32
    return %c0_i32, %c0_i32_0 : i32, i32
  }
  func.func @transform_3(%arg0: i32) -> (i32, i32) {
    %c0_i32 = arith.constant 0 : i32
    %c0_i32_0 = arith.constant 0 : i32
    %c0_i32_1 = arith.constant 0 : i32
    return %c0_i32, %c0_i32_0 : i32, i32
  }
  func.func @transform_4(%arg0: i32) -> (i32, i32) {
    %c0_i32 = arith.constant 0 : i32
    %c0_i32_0 = arith.constant 0 : i32
    %c0_i32_1 = arith.constant 0 : i32
    return %c0_i32, %c0_i32_0 : i32, i32
  }
  func.func @transform_5(%arg0: i32) -> (i32, i32) {
    %c0_i32 = arith.constant 0 : i32
    %c0_i32_0 = arith.constant 0 : i32
    %c0_i32_1 = arith.constant 0 : i32
    return %c0_i32, %c0_i32_0 : i32, i32
  }
  func.func @transform_6(%arg0: i32) -> (i32, i32) {
    %c0_i32 = arith.constant 0 : i32
    %c0_i32_0 = arith.constant 0 : i32
    %c0_i32_1 = arith.constant 0 : i32
    return %c0_i32, %c0_i32_0 : i32, i32
  }
  func.func @transform_7(%arg0: i32) -> (i32, i32) {
    %c0_i32 = arith.constant 0 : i32
    %c0_i32_0 = arith.constant 0 : i32
    %c0_i32_1 = arith.constant 0 : i32
    return %c0_i32, %c0_i32_0 : i32, i32
  }
  func.func @transform_8(%arg0: i32) -> (i32, i32) {
    %c0_i32 = arith.constant 0 : i32
    %c0_i32_0 = arith.constant 0 : i32
    %c0_i32_1 = arith.constant 0 : i32
    return %c0_i32, %c0_i32_0 : i32, i32
  }
  func.func @transform_9(%arg0: i32) -> (i32, i32, i32) {
    %c0_i32 = arith.constant 0 : i32
    %c0_i32_0 = arith.constant 0 : i32
    %c0_i32_1 = arith.constant 0 : i32
    return %arg0, %c0_i32, %c0_i32_0 : i32, i32, i32
  }
}

</mosaic_0001>

<bundles_post_ra>
// kernel: tpu_custom_call.1
= control target key start
LH: loop header
LB: loop body
LE: loop exit
PB: predicated region body
PF: predicated region fallthrough
CT: control target
= control target key end

     0   :  { %14 = vsyncpa [#allocation3], 0  ;;  %s3820_s0 = inlined_call_operand.vmem [shape: f32[2,8,256], index: 0, kind: input, shape index: {}]   ;;  %s3821_s1 = inlined_call_operand.vmem [shape: f32[128,128], index: 1, kind: input, shape index: {}]   ;;  %s3822_s2 = inlined_call_operand.vmem [shape: f32[128,8], index: 2, kind: input, shape index: {}]   ;;  %s3823_s3 = inlined_call_operand.vmem [shape: f32[128,8], index: 3, kind: input, shape index: {}]   ;;  %s3824_s4 = inlined_call_operand.vmem [shape: f32[128,8], index: 4, kind: input, shape index: {}]   ;;  %s3825_s5 = inlined_call_operand.vmem [shape: f32[8,128], index: 5, kind: input, shape index: {}]   ;;  %s3826_s6 = inlined_call_operand.vmem [shape: f32[8,1], index: 6, kind: input, shape index: {}]   ;;  %s3827_s7 = inlined_call_operand.vmem [shape: f32[8,1], index: 7, kind: input, shape index: {}]   ;;  %s3828_s8 = inlined_call_operand.vmem [shape: f32[8,1], index: 8, kind: input, shape index: {}]   ;;  %s3829_s9 = inlined_call_operand.hbm [shape: f32[2,8,256], index: 9, kind: output, shape index: {}]  }
   0x1   :  { %16 = vsyncpa [#allocation3 + $0x1], 0  ;;  %s2781_s30 = smov 0   ;;  %s2783_s10 = smov 0  }
   0x2   :  { %s2785_s11 = smov 0   ;;  %s2787_s12 = smov 0  }
   0x3 LB: > { %s2802_s13 = sadd.s32 4294967295, %s2724_s12   ;;  %s2149_s14 = sadd.s32 4294967294, %s2724_s12   ;;  %s2724_s12 = sphi %s2787_s12, %s3855_s12   ;;  %s2720_s11 = sphi %s2785_s11, %s3854_s11   ;;  %s2716_s10 = sphi %s2783_s10, %s3853_s10   ;;  %s2712_s30 = sphi %s2781_s30, %s3852_s30  }
   0x4   : > { %s2806_s15 = sadd.s32 1, %s2724_s12   ;;  %s223_s16 = sadd.s32 1, %s2720_s11 }
   0x5   : > { %s220_s17 = ssub.s32 %s2724_s12, %s2806_s15  ;;  %p233_p0 = scmp.ne.s32.totalorder %s2720_s11, %s2716_s10 }
   0x6   : > { %p221_p1 = scmp.eq.s32.totalorder %s220_s17, 0  ;;  %p234_p2 = scmp.eq.s32.totalorder %s2802_s13, 1 }
   0x7   : > { %p239_p3 = scmp.ne.s32.totalorder %s2716_s10, %s2712_s30  ;;  %p240_p4 = scmp.eq.s32.totalorder %s2149_s14, 1 }
   0x8   : > { %s2817_s18 = scalar_select %p221_p1, %s2720_s11, %s223_s16  }
   0x9   : > { %p2819_p5 = por %p234_p2, %p233_p0  ;;  %p2823_p6 = por %p240_p4, %p239_p3 }
   0xa   : > { %p2152_p7 = scmp.ge.s32.totalorder %s2724_s12, 1  ;;  %p290_p8 = scmp.lt.s32.totalorder %s2724_s12, 3 }
   0xc   : > { %p291_p9 = pnand %p2152_p7, %p290_p8 }
   0xe   : > { %294 = sbr.rel (%p291_p9) target bundleno = 1997 (0x7cd), region = 56 }
  0x15   : > { %p326_p10 = scmp.lt.s32.totalorder %s2802_s13, 1  ;;  %v3830_v0 = vmov 0.0   ;;  %v349_v3 = vld [vmem:[%s3823_s3] sm:$0xff]  ;;  %vm365_vm0 = vcmask 64512   ;;  %v350_v4 = vld [vmem:[%s3823_s3 + $0x8] sm:$0xff]  ;;  %v351_v5 = vld [vmem:[%s3823_s3 + $0x10] sm:$0xff] }
  0x16   : > { %478 = vmatprep.mubr.f32.mxu0 %v3830_v0  ;;  %959 = vmatprep.mubr.f32.mxu1 %v3830_v0  ;;  %v352_v6 = vld [vmem:[%s3823_s3 + $0x18] sm:$0xff]  ;;  %v353_v7 = vld [vmem:[%s3823_s3 + $0x20] sm:$0xff]  ;;  %v354_v8 = vld [vmem:[%s3823_s3 + $0x28] sm:$0xff]  ;;  %vm2728_vm1 = vmmov 0   ;;  %s2210_s24 = sshll.u32 %s2802_s13, 8 }
  0x17   : > { %s327_s21 = scalar_select %p326_p10, %s2802_s13, 1  ;;  %v355_v9 = vld [vmem:[%s3823_s3 + $0x30] sm:$0xff]  ;;  %v356_v10 = vld [vmem:[%s3823_s3 + $0x38] sm:$0xff]  ;;  %v357_v11 = vld [vmem:[%s3823_s3 + $0x40] sm:$0xff] }
  0x18   : > { %v358_v12 = vld [vmem:[%s3823_s3 + $0x48] sm:$0xff]  ;;  %v359_v13 = vld [vmem:[%s3823_s3 + $0x50] sm:$0xff]  ;;  %v360_v14 = vld [vmem:[%s3823_s3 + $0x58] sm:$0xff] }
  0x19   : > { %s2209_s22 = sshll.u32 %s327_s21, 4  ;;  %v361_v15 = vld [vmem:[%s3823_s3 + $0x60] sm:$0xff]  ;;  %v362_v16 = vld [vmem:[%s3823_s3 + $0x68] sm:$0xff]  ;;  %v363_v17 = vld [vmem:[%s3823_s3 + $0x70] sm:$0xff]  ;;  %s323_s21 = sand.u32 1, %s2716_s10  }
  0x1a   : > { %s2836_s25 = scalar_lea.vmem %s3820_s0, %s2209_s22  ;;  %v364_v18 = vld [vmem:[%s3823_s3 + $0x78] sm:$0xff]  ;;  %v831_v19 = vld [vmem:[%s3824_s4] sm:$0xff]  ;;  %v832_v20 = vld [vmem:[%s3824_s4 + $0x8] sm:$0xff]  ;;  %s2153_s22 = sshll.u32 %s323_s21, 4 }
  0x1b   : > { %v332_v1 = vld [vmem:[%s2836_s25 + $0x8] sm:$0xff]  ;;  %v331_v2 = vld [vmem:[%s2836_s25] sm:$0xff]  ;;  %v833_v21 = vld [vmem:[%s3824_s4 + $0x10] sm:$0xff]  ;;  %s325_s26 = scalar_lea.vmem [#allocation2], %s2153_s22  ;;  %s2076_s13 = scalar_lea.sflag [#allocation3], %s323_s21 }
  0x1c   : > { %414 = vmatprep.subr.mxu0 %v332_v1  ;;  %895 = vmatprep.subr.mxu1 %v332_v1  ;;  %v834_v22 = vld [vmem:[%s3824_s4 + $0x18] sm:$0xff]  ;;  %v835_v23 = vld [vmem:[%s3824_s4 + $0x20] sm:$0xff]  ;;  %v836_v24 = vld [vmem:[%s3824_s4 + $0x28] sm:$0xff] }
  0x1d   : > { %415 = vmatpush1.msra.mxu0 %v331_v2  ;;  %896 = vmatpush1.msra.mxu1 %v331_v2  ;;  %v837_v25 = vld [vmem:[%s3824_s4 + $0x30] sm:$0xff]  ;;  %v838_v26 = vld [vmem:[%s3824_s4 + $0x38] sm:$0xff]  ;;  %v839_v27 = vld [vmem:[%s3824_s4 + $0x40] sm:$0xff] }
  0x1e   : > { %2156 = vmatmul.mubr.msk.f32.vlgmr.msra.gmra.mrb[0].mxu0 %vm365_vm0, %v349_v3  ;;  %2172 = vmatmul.mubr.msk.f32.vlgmr.msra.gmra.mrb[0].mxu1 %vm365_vm0, %v831_v19  ;;  %v840_v28 = vld [vmem:[%s3824_s4 + $0x48] sm:$0xff]  ;;  %v841_v29 = vld [vmem:[%s3824_s4 + $0x50] sm:$0xff]  ;;  %v842_v30 = vld [vmem:[%s3824_s4 + $0x58] sm:$0xff] }
  0x1f   : > { %484 = vmatprep.mubr.f32.mxu0 %v3830_v0  ;;  %965 = vmatprep.mubr.f32.mxu1 %v3830_v0  ;;  %v843_v31 = vld [vmem:[%s3824_s4 + $0x60] sm:$0xff]  ;;  %v844_v32 = vld [vmem:[%s3824_s4 + $0x68] sm:$0xff]  ;;  %v845_v33 = vld [vmem:[%s3824_s4 + $0x70] sm:$0xff] }
  0x20   : > { %v846_v34 = vld [vmem:[%s3824_s4 + $0x78] sm:$0xff] }
  0x22   : > { %2157 = vmatmul.mubr.msk.f32.gmra.mrb[2].mxu0 %vm365_vm0, %v350_v4  ;;  %2173 = vmatmul.mubr.msk.f32.gmra.mrb[2].mxu1 %vm365_vm0, %v832_v20 }
  0x23   : > { %490 = vmatprep.mubr.f32.mxu0 %v3830_v0  ;;  %971 = vmatprep.mubr.f32.mxu1 %v3830_v0 }
  0x26   : > { %2158 = vmatmul.mubr.msk.f32.gmra.mrb[4].mxu0 %vm365_vm0, %v351_v5  ;;  %2174 = vmatmul.mubr.msk.f32.gmra.mrb[4].mxu1 %vm365_vm0, %v833_v21 }
  0x27   : > { %496 = vmatprep.mubr.f32.mxu0 %v3830_v0  ;;  %977 = vmatprep.mubr.f32.mxu1 %v3830_v0 }
  0x2a   : > { %2159 = vmatmul.mubr.msk.f32.gmra.mrb[6].mxu0 %vm365_vm0, %v352_v6  ;;  %2175 = vmatmul.mubr.msk.f32.gmra.mrb[6].mxu1 %vm365_vm0, %v834_v22 }
  0x2b   : > { %502 = vmatprep.mubr.f32.mxu0 %v3830_v0  ;;  %983 = vmatprep.mubr.f32.mxu1 %v3830_v0 }
  0x2e   : > { %2160 = vmatmul.mubr.msk.f32.gmra.mrb[8].mxu0 %vm365_vm0, %v353_v7  ;;  %2176 = vmatmul.mubr.msk.f32.gmra.mrb[8].mxu1 %vm365_vm0, %v835_v23 }
  0x2f   : > { %508 = vmatprep.mubr.f32.mxu0 %v3830_v0  ;;  %989 = vmatprep.mubr.f32.mxu1 %v3830_v0 }
  0x32   : > { %2161 = vmatmul.mubr.msk.f32.gmra.mrb[10].mxu0 %vm365_vm0, %v354_v8  ;;  %2177 = vmatmul.mubr.msk.f32.gmra.mrb[10].mxu1 %vm365_vm0, %v836_v24 }
  0x33   : > { %514 = vmatprep.mubr.f32.mxu0 %v3830_v0  ;;  %995 = vmatprep.mubr.f32.mxu1 %v3830_v0 }
  0x36   : > { %2162 = vmatmul.mubr.msk.f32.gmra.mrb[12].mxu0 %vm365_vm0, %v355_v9  ;;  %2178 = vmatmul.mubr.msk.f32.gmra.mrb[12].mxu1 %vm365_vm0, %v837_v25 }
  0x37   : > { %520 = vmatprep.mubr.f32.mxu0 %v3830_v0  ;;  %1001 = vmatprep.mubr.f32.mxu1 %v3830_v0 }
  0x3a   : > { %2163 = vmatmul.mubr.msk.f32.gmra.mrb[14].mxu0 %vm365_vm0, %v356_v10  ;;  %2179 = vmatmul.mubr.msk.f32.gmra.mrb[14].mxu1 %vm365_vm0, %v838_v26 }
  0x3b   : > { %526 = vmatprep.mubr.f32.mxu0 %v3830_v0  ;;  %1007 = vmatprep.mubr.f32.mxu1 %v3830_v0 }
  0x3e   : > { %2164 = vmatmul.mubr.msk.f32.gmra.mrb[16].mxu0 %vm365_vm0, %v357_v11  ;;  %2180 = vmatmul.mubr.msk.f32.gmra.mrb[16].mxu1 %vm365_vm0, %v839_v27 }
  0x3f   : > { %532 = vmatprep.mubr.f32.mxu0 %v3830_v0  ;;  %1013 = vmatprep.mubr.f32.mxu1 %v3830_v0 }
  0x42   : > { %2165 = vmatmul.mubr.msk.f32.gmra.mrb[18].mxu0 %vm365_vm0, %v358_v12  ;;  %2181 = vmatmul.mubr.msk.f32.gmra.mrb[18].mxu1 %vm365_vm0, %v840_v28 }
  0x43   : > { %538 = vmatprep.mubr.f32.mxu0 %v3830_v0  ;;  %1019 = vmatprep.mubr.f32.mxu1 %v3830_v0 }
  0x46   : > { %2166 = vmatmul.mubr.msk.f32.gmra.mrb[20].mxu0 %vm365_vm0, %v359_v13  ;;  %2182 = vmatmul.mubr.msk.f32.gmra.mrb[20].mxu1 %vm365_vm0, %v841_v29 }
  0x47   : > { %544 = vmatprep.mubr.f32.mxu0 %v3830_v0  ;;  %1025 = vmatprep.mubr.f32.mxu1 %v3830_v0 }
  0x4a   : > { %2167 = vmatmul.mubr.msk.f32.gmra.mrb[22].mxu0 %vm365_vm0, %v360_v14  ;;  %2183 = vmatmul.mubr.msk.f32.gmra.mrb[22].mxu1 %vm365_vm0, %v842_v30 }
  0x4b   : > { %550 = vmatprep.mubr.f32.mxu0 %v3830_v0  ;;  %1031 = vmatprep.mubr.f32.mxu1 %v3830_v0 }
  0x4e   : > { %2168 = vmatmul.mubr.msk.f32.gmra.mrb[24].mxu0 %vm365_vm0, %v361_v15  ;;  %2184 = vmatmul.mubr.msk.f32.gmra.mrb[24].mxu1 %vm365_vm0, %v843_v31 }
  0x4f   : > { %556 = vmatprep.mubr.f32.mxu0 %v3830_v0  ;;  %1037 = vmatprep.mubr.f32.mxu1 %v3830_v0 }
  0x52   : > { %2169 = vmatmul.mubr.msk.f32.gmra.mrb[26].mxu0 %vm365_vm0, %v362_v16  ;;  %2185 = vmatmul.mubr.msk.f32.gmra.mrb[26].mxu1 %vm365_vm0, %v844_v32 }
  0x53   : > { %562 = vmatprep.mubr.f32.mxu0 %v3830_v0  ;;  %1043 = vmatprep.mubr.f32.mxu1 %v3830_v0 }
  0x56   : > { %2170 = vmatmul.mubr.msk.f32.gmra.mrb[28].mxu0 %vm365_vm0, %v363_v17  ;;  %2186 = vmatmul.mubr.msk.f32.gmra.mrb[28].mxu1 %vm365_vm0, %v845_v33 }
  0x57   : > { %568 = vmatprep.mubr.f32.mxu0 %v3830_v0  ;;  %1049 = vmatprep.mubr.f32.mxu1 %v3830_v0 }
  0x5a   : > { %2171 = vmatmul.mubr.msk.f32.gmra.mrb[30].mxu0 %vm365_vm0, %v364_v18  ;;  %2187 = vmatmul.mubr.msk.f32.gmra.mrb[30].mxu1 %vm365_vm0, %v846_v34 }
  0x5b   : > { %2260 = vmatprep.mubr.msk.f32.mxu1 %vm2728_vm1, %v3830_v0 }
  0xf1   : > { %v2998_v35 = vpop.f32.mrb[0].mxu0  ;;  %v961_v20 = vpop.f32.mrb[0].mxu1 }
  0xf2   : > { %v3000_v36 = vpop.f32.mrb[1].mxu0  ;;  %v963_v21 = vpop.f32.mrb[1].mxu1 }
  0xf3   : > { %v575_v37 = vmax.f32 %v2998_v35, %v3000_v36 }
  0xf5   : > { %576 = vmax.xlane.f32.xlu0 %v575_v37  ;;  %v3004_v38 = vpop.f32.mrb[2].mxu0  ;;  %v967_v22 = vpop.f32.mrb[2].mxu1 }
  0xf6   : > { %v3006_v39 = vpop.f32.mrb[3].mxu0  ;;  %v2265_v23 = vpack.c.bf16 %v967_v22, %v961_v20  ;;  %v969_v24 = vpop.f32.mrb[3].mxu1 }
  0xf7   : > { %v578_v40 = vmax.f32 %v3004_v38, %v3006_v39  ;;  %v2263_v25 = vpack.c.bf16 %v969_v24, %v963_v21 }
  0xf9   : > { %579 = vmax.xlane.f32.xlu0 %v578_v40  ;;  %v3010_v41 = vpop.f32.mrb[4].mxu0  ;;  %2264 = vmatprep.subr.bf16.mxu0 %v2263_v25  ;;  %v973_v26 = vpop.f32.mrb[4].mxu1 }
  0xfa   : > { %v3012_v42 = vpop.f32.mrb[5].mxu0  ;;  %2266 = vmatpush1.bf16.xpose.msra.mxu0 %v2265_v23  ;;  %v975_v27 = vpop.f32.mrb[5].mxu1 }
  0xfb   : > { %v581_v43 = vmax.f32 %v3010_v41, %v3012_v42 }
  0xfd   : > { %582 = vmax.xlane.f32.xlu1 %v581_v43  ;;  %v3016_v44 = vpop.f32.mrb[6].mxu0  ;;  %v979_v28 = vpop.f32.mrb[6].mxu1 }
  0xfe   : > { %v3018_v45 = vpop.f32.mrb[7].mxu0  ;;  %v2269_v29 = vpack.c.bf16 %v979_v28, %v973_v26  ;;  %v981_v30 = vpop.f32.mrb[7].mxu1 }
  0xff   : > { %v584_v46 = vmax.f32 %v3016_v44, %v3018_v45  ;;  %v2267_v31 = vpack.c.bf16 %v981_v30, %v975_v27 }
 0x101   : > { %585 = vmax.xlane.f32.xlu1 %v584_v46  ;;  %v3022_v47 = vpop.f32.mrb[8].mxu0  ;;  %2268 = vmatprep.subr.bf16.mxu0 %v2267_v31  ;;  %v985_v32 = vpop.f32.mrb[8].mxu1 }
 0x102   : > { %v3024_v48 = vpop.f32.mrb[9].mxu0  ;;  %2270 = vmatpush1.bf16.xpose.msra.mxu0 %v2269_v29  ;;  %v987_v33 = vpop.f32.mrb[9].mxu1 }
 0x103   : > { %v587_v49 = vmax.f32 %v3022_v47, %v3024_v48 }
 0x105   : > { %588 = vmax.xlane.f32.xlu0 %v587_v49  ;;  %v3028_v50 = vpop.f32.mrb[10].mxu0  ;;  %v991_v34 = vpop.f32.mrb[10].mxu1 }
 0x106   : > { %v3030_v51 = vpop.f32.mrb[11].mxu0  ;;  %v2273_v37 = vpack.c.bf16 %v991_v34, %v985_v32  ;;  %v993_v40 = vpop.f32.mrb[11].mxu1 }
 0x107   : > { %v590_v52 = vmax.f32 %v3028_v50, %v3030_v51  ;;  %v2271_v43 = vpack.c.bf16 %v993_v40, %v987_v33 }
 0x109   : > { %591 = vmax.xlane.f32.xlu1 %v590_v52  ;;  %v3034_v53 = vpop.f32.mrb[12].mxu0  ;;  %2272 = vmatprep.subr.bf16.mxu0 %v2271_v43  ;;  %v997_v46 = vpop.f32.mrb[12].mxu1 }
 0x10a   : > { %v3036_v54 = vpop.f32.mrb[13].mxu0  ;;  %2274 = vmatpush1.bf16.xpose.msra.mxu0 %v2273_v37  ;;  %v999_v49 = vpop.f32.mrb[13].mxu1 }
 0x10b   : > { %v593_v55 = vmax.f32 %v3034_v53, %v3036_v54 }
 0x10d   : > { %594 = vmax.xlane.f32.xlu0 %v593_v55  ;;  %v3040_v56 = vpop.f32.mrb[14].mxu0  ;;  %v1003_v52 = vpop.f32.mrb[14].mxu1 }
 0x10e   : > { %v3042_v57 = vpop.f32.mrb[15].mxu0  ;;  %v2277_v55 = vpack.c.bf16 %v1003_v52, %v997_v46 }
 0x10f   : > { %v596_v58 = vmax.f32 %v3040_v56, %v3042_v57 }
 0x111   : > { %597 = vmax.xlane.f32.xlu1 %v596_v58  ;;  %v3046_v59 = vpop.f32.mrb[16].mxu0  ;;  %v1005_v58 = vpop.f32.mrb[15].mxu1 }
 0x112   : > { %v3048_v60 = vpop.f32.mrb[17].mxu0 }
 0x113   : > { %v599_v61 = vmax.f32 %v3046_v59, %v3048_v60 }
 0x115   : > { %600 = vmax.xlane.f32.xlu0 %v599_v61  ;;  %v3052_v62 = vpop.f32.mrb[18].mxu0  ;;  %v2275_v61 = vpack.c.bf16 %v1005_v58, %v999_v49 }
 0x116   : > { %v3054_v63 = vpop.f32.mrb[19].mxu0 }
 0x117   : > { %v602_v1 = vmax.f32 %v3052_v62, %v3054_v63  ;;  %2276 = vmatprep.subr.bf16.mxu0 %v2275_v61 }
 0x118   : > { %2278 = vmatpush1.bf16.xpose.msra.mxu0 %v2277_v55 }
 0x119   : > { %603 = vmax.xlane.f32.xlu1 %v602_v1  ;;  %v3058_v2 = vpop.f32.mrb[20].mxu0 }
 0x11a   : > { %v3060_v3 = vpop.f32.mrb[21].mxu0 }
 0x11b   : > { %v605_v4 = vmax.f32 %v3058_v2, %v3060_v3 }
 0x11d   : > { %606 = vmax.xlane.f32.xlu0 %v605_v4  ;;  %v3064_v5 = vpop.f32.mrb[22].mxu0  ;;  %v1009_v4 = vpop.f32.mrb[16].mxu1 }
 0x11e   : > { %v3066_v6 = vpop.f32.mrb[23].mxu0 }
 0x11f   : > { %v608_v7 = vmax.f32 %v3064_v5, %v3066_v6 }
 0x121   : > { %609 = vmax.xlane.f32.xlu1 %v608_v7  ;;  %v3070_v8 = vpop.f32.mrb[24].mxu0 }
 0x122   : > { %v3072_v9 = vpop.f32.mrb[25].mxu0 }
 0x123   : > { %v611_v10 = vmax.f32 %v3070_v8, %v3072_v9 }
 0x125   : > { %612 = vmax.xlane.f32.xlu0 %v611_v10  ;;  %v3076_v11 = vpop.f32.mrb[26].mxu0 }
 0x126   : > { %v3078_v12 = vpop.f32.mrb[27].mxu0 }
 0x127   : > { %v614_v13 = vmax.f32 %v3076_v11, %v3078_v12 }
 0x129   : > { %615 = vmax.xlane.f32.xlu1 %v614_v13  ;;  %v3082_v14 = vpop.f32.mrb[28].mxu0  ;;  %v1011_v13 = vpop.f32.mrb[17].mxu1 }
 0x12a   : > { %v3084_v15 = vpop.f32.mrb[29].mxu0  ;;  %v1015_v21 = vpop.f32.mrb[18].mxu1 }
 0x12b   : > { %v617_v16 = vmax.f32 %v3082_v14, %v3084_v15  ;;  %v2281_v24 = vpack.c.bf16 %v1015_v21, %v1009_v4  ;;  %v1017_v25 = vpop.f32.mrb[19].mxu1 }
 0x12c   : > { %v2279_v26 = vpack.c.bf16 %v1017_v25, %v1011_v13 }
 0x12d   : > { %618 = vmax.xlane.f32.xlu0 %v617_v16  ;;  %v3088_v17 = vpop.f32.mrb[30].mxu0 }
 0x12e   : > { %v3090_v18 = vpop.f32.mrb[31].mxu0  ;;  %2280 = vmatprep.subr.bf16.mxu0 %v2279_v26 }
 0x12f   : > { %v620_v19 = vmax.f32 %v3088_v17, %v3090_v18  ;;  %2282 = vmatpush1.bf16.xpose.msra.mxu0 %v2281_v24 }
 0x131   : > { %621 = vmax.xlane.f32.xlu1 %v620_v19 }
 0x182   : > { %v577_v1 = vpop.xlane.xlu0 %576 }
 0x183   : > { %v623_v7 = vsub.f32 %v2998_v35, %v577_v1  ;;  %v624_v10 = vsub.f32 %v3000_v36, %v577_v1  ;;  %v1021_v36 = vpop.f32.mrb[20].mxu1 }
 0x184   : > { %v1023_v31 = vpop.f32.mrb[21].mxu1 }
 0x185   : > { %v655_v16 = vmul.f32 1.442695, %v623_v7  ;;  %v657_v19 = vmul.f32 1.442695, %v624_v10  ;;  %v1027_v33 = vpop.f32.mrb[22].mxu1 }
 0x186   : > { %v580_v20 = vpop.xlane.xlu0 %579  ;;  %v2285_v40 = vpack.c.bf16 %v1027_v33, %v1021_v36  ;;  %v1029_v43 = vpop.f32.mrb[23].mxu1 }
 0x187   : > { %2434 = vpow2.f32 %v655_v16  ;;  %v625_v22 = vsub.f32 %v3004_v38, %v580_v20  ;;  %v626_v23 = vsub.f32 %v3006_v39, %v580_v20  ;;  %v2283_v46 = vpack.c.bf16 %v1029_v43, %v1023_v31  ;;  %v1033_v58 = vpop.f32.mrb[24].mxu1 }
 0x188   : > { %2436 = vpow2.f32 %v657_v19  ;;  %v1035_v1 = vpop.f32.mrb[25].mxu1 }
 0x189   : > { %v659_v27 = vmul.f32 1.442695, %v625_v22  ;;  %v661_v28 = vmul.f32 1.442695, %v626_v23  ;;  %2284 = vmatprep.subr.bf16.mxu0 %v2283_v46  ;;  %v1039_v19 = vpop.f32.mrb[26].mxu1 }
 0x18a   : > { %v583_v35 = vpop.xlane.xlu1 %582  ;;  %2286 = vmatpush1.bf16.xpose.msra.mxu0 %v2285_v40  ;;  %v1041_v21 = vpop.f32.mrb[27].mxu1  ;;  %v2289_v22 = vpack.c.bf16 %v1039_v19, %v1033_v58 }
 0x18b   : > { %2438 = vpow2.f32 %v659_v27  ;;  %v627_v29 = vsub.f32 %v3010_v41, %v583_v35  ;;  %v628_v30 = vsub.f32 %v3012_v42, %v583_v35  ;;  %v2287_v23 = vpack.c.bf16 %v1041_v21, %v1035_v1  ;;  %v1045_v35 = vpop.f32.mrb[28].mxu1 }
 0x18c   : > { %2440 = vpow2.f32 %v661_v28 }
 0x18d   : > { %v663_v38 = vmul.f32 1.442695, %v627_v29  ;;  %v665_v32 = vmul.f32 1.442695, %v628_v30  ;;  %2288 = vmatprep.subr.bf16.mxu0 %v2287_v23  ;;  %v1047_v29 = vpop.f32.mrb[29].mxu1 }
 0x18e   : > { %v586_v39 = vpop.xlane.xlu1 %585  ;;  %v1051_v33 = vpop.f32.mrb[30].mxu1 }
 0x18f   : > { %2442 = vpow2.f32 %v663_v38  ;;  %v629_v34 = vsub.f32 %v3016_v44, %v586_v39  ;;  %v630_v37 = vsub.f32 %v3018_v45, %v586_v39  ;;  %v2293_v40 = vpack.c.bf16 %v1051_v33, %v1045_v35 }
 0x190   : > { %2444 = vpow2.f32 %v665_v32 }
 0x191   : > { %v3102_v49 = vpop.eup %2434  ;;  %v667_v41 = vmul.f32 1.442695, %v629_v34  ;;  %v669_v42 = vmul.f32 1.442695, %v630_v37  ;;  %v1053_v37 = vpop.f32.mrb[31].mxu1 }
 0x192   : > { %v3104_v52 = vpop.eup %2436  ;;  %v589_v55 = vpop.xlane.xlu0 %588  ;;  %2290 = vmatpush1.bf16.xpose.msra.mxu0 %v2289_v22  ;;  %v2291_v43 = vpack.c.bf16 %v1053_v37, %v1047_v29 }
 0x193   : > { %2446 = vpow2.f32 %v667_v41  ;;  %v631_v61 = vsub.f32 %v3022_v47, %v589_v55  ;;  %v632_v44 = vsub.f32 %v3024_v48, %v589_v55  ;;  %v719_v45 = vadd.f32 %v3104_v52, %v3102_v49 }
 0x194   : > { %2448 = vpow2.f32 %v669_v42  ;;  %2292 = vmatprep.subr.bf16.mxu0 %v2291_v43 }
 0x195   : > { %v3110_v4 = vpop.eup %2438  ;;  %v671_v7 = vmul.f32 1.442695, %v631_v61  ;;  %v673_v10 = vmul.f32 1.442695, %v632_v44  ;;  %720 = vadd.xlane.f32.xlu0 %v719_v45 }
 0x196   : > { %v3112_v13 = vpop.eup %2440  ;;  %v592_v16 = vpop.xlane.xlu1 %591 }
 0x197   : > { %2450 = vpow2.f32 %v671_v7  ;;  %v633_v47 = vsub.f32 %v3028_v50, %v592_v16  ;;  %v634_v48 = vsub.f32 %v3030_v51, %v592_v16  ;;  %v722_v20 = vadd.f32 %v3112_v13, %v3110_v4 }
 0x198   : > { %2452 = vpow2.f32 %v673_v10 }
 0x199   : > { %v3118_v24 = vpop.eup %2442  ;;  %v675_v25 = vmul.f32 1.442695, %v633_v47  ;;  %v677_v26 = vmul.f32 1.442695, %v634_v48  ;;  %723 = vadd.xlane.f32.xlu1 %v722_v20 }
 0x19a   : > { %v3120_v27 = vpop.eup %2444  ;;  %v595_v28 = vpop.xlane.xlu0 %594  ;;  %2294 = vmatpush1.bf16.xpose.msra.mxu0 %v2293_v40 }
 0x19b   : > { %2454 = vpow2.f32 %v675_v25  ;;  %v635_v50 = vsub.f32 %v3034_v53, %v595_v28  ;;  %v636_v51 = vsub.f32 %v3036_v54, %v595_v28  ;;  %v725_v36 = vadd.f32 %v3120_v27, %v3118_v24 }
 0x19c   : > { %2456 = vpow2.f32 %v677_v26 }
 0x19d   : > { %v3126_v30 = vpop.eup %2446  ;;  %v679_v31 = vmul.f32 1.442695, %v635_v50  ;;  %v681_v38 = vmul.f32 1.442695, %v636_v51  ;;  %726 = vadd.xlane.f32.xlu0 %v725_v36 }
 0x19e   : > { %v3128_v32 = vpop.eup %2448  ;;  %v598_v39 = vpop.xlane.xlu1 %597 }
 0x19f   : > { %2458 = vpow2.f32 %v679_v31  ;;  %v637_v53 = vsub.f32 %v3040_v56, %v598_v39  ;;  %v638_v54 = vsub.f32 %v3042_v57, %v598_v39  ;;  %v728_v34 = vadd.f32 %v3128_v32, %v3126_v30 }
 0x1a0   : > { %2460 = vpow2.f32 %v681_v38 }
 0x1a1   : > { %v3134_v46 = vpop.eup %2450  ;;  %v683_v41 = vmul.f32 1.442695, %v637_v53  ;;  %v685_v42 = vmul.f32 1.442695, %v638_v54  ;;  %729 = vadd.xlane.f32.xlu1 %v728_v34 }
 0x1a2   : > { %v3136_v55 = vpop.eup %2452  ;;  %v601_v58 = vpop.xlane.xlu0 %600 }
 0x1a3   : > { %2462 = vpow2.f32 %v683_v41  ;;  %v639_v56 = vsub.f32 %v3046_v59, %v601_v58  ;;  %v640_v57 = vsub.f32 %v3048_v60, %v601_v58  ;;  %v731_v61 = vadd.f32 %v3136_v55, %v3134_v46 }
 0x1a4   : > { %2464 = vpow2.f32 %v685_v42 }
 0x1a5   : > { %v3142_v44 = vpop.eup %2454  ;;  %v687_v45 = vmul.f32 1.442695, %v639_v56  ;;  %v689_v1 = vmul.f32 1.442695, %v640_v57  ;;  %732 = vadd.xlane.f32.xlu0 %v731_v61 }
 0x1a6   : > { %v3144_v7 = vpop.eup %2456  ;;  %v604_v10 = vpop.xlane.xlu1 %603 }
 0x1a7   : > { %2466 = vpow2.f32 %v687_v45  ;;  %v641_v16 = vsub.f32 %v3052_v62, %v604_v10  ;;  %v642_v59 = vsub.f32 %v3054_v63, %v604_v10  ;;  %v734_v60 = vadd.f32 %v3144_v7, %v3142_v44 }
 0x1a8   : > { %2468 = vpow2.f32 %v689_v1 }
 0x1a9   : > { %v3150_v19 = vpop.eup %2458  ;;  %v691_v47 = vmul.f32 1.442695, %v641_v16  ;;  %v693_v48 = vmul.f32 1.442695, %v642_v59  ;;  %735 = vadd.xlane.f32.xlu1 %v734_v60 }
 0x1aa   : > { %v3152_v20 = vpop.eup %2460  ;;  %v607_v21 = vpop.xlane.xlu0 %606 }
 0x1ab   : > { %2470 = vpow2.f32 %v691_v47  ;;  %v643_v22 = vsub.f32 %v3058_v2, %v607_v21  ;;  %v644_v23 = vsub.f32 %v3060_v3, %v607_v21  ;;  %v737_v62 = vadd.f32 %v3152_v20, %v3150_v19 }
 0x1ac   : > { %2472 = vpow2.f32 %v693_v48 }
 0x1ad   : > { %v3158_v63 = vpop.eup %2462  ;;  %v695_v25 = vmul.f32 1.442695, %v643_v22  ;;  %v697_v26 = vmul.f32 1.442695, %v644_v23  ;;  %738 = vadd.xlane.f32.xlu0 %v737_v62 }
 0x1ae   : > { %v3160_v28 = vpop.eup %2464  ;;  %v610_v35 = vpop.xlane.xlu1 %609 }
 0x1af   : > { %2474 = vpow2.f32 %v695_v25  ;;  %v645_v50 = vsub.f32 %v3064_v5, %v610_v35  ;;  %v646_v51 = vsub.f32 %v3066_v6, %v610_v35  ;;  %v740_v2 = vadd.f32 %v3160_v28, %v3158_v63 }
 0x1b0   : > { %2476 = vpow2.f32 %v697_v26 }
 0x1b1   : > { %v3166_v3 = vpop.eup %2466  ;;  %v699_v36 = vmul.f32 1.442695, %v645_v50  ;;  %v701_v29 = vmul.f32 1.442695, %v646_v51  ;;  %741 = vadd.xlane.f32.xlu1 %v740_v2 }
 0x1b2   : > { %v3168_v31 = vpop.eup %2468  ;;  %v613_v38 = vpop.xlane.xlu0 %612 }
 0x1b3   : > { %2478 = vpow2.f32 %v699_v36  ;;  %v647_v39 = vsub.f32 %v3070_v8, %v613_v38  ;;  %v648_v33 = vsub.f32 %v3072_v9, %v613_v38  ;;  %v743_v5 = vadd.f32 %v3168_v31, %v3166_v3 }
 0x1b4   : > { %2480 = vpow2.f32 %v701_v29 }
 0x1b5   : > { %v3174_v6 = vpop.eup %2470  ;;  %v703_v53 = vmul.f32 1.442695, %v647_v39  ;;  %v705_v54 = vmul.f32 1.442695, %v648_v33  ;;  %744 = vadd.xlane.f32.xlu0 %v743_v5 }
 0x1b6   : > { %v3176_v34 = vpop.eup %2472  ;;  %v616_v37 = vpop.xlane.xlu1 %615 }
 0x1b7   : > { %2482 = vpow2.f32 %v703_v53  ;;  %v649_v40 = vsub.f32 %v3076_v11, %v616_v37  ;;  %v650_v43 = vsub.f32 %v3078_v12, %v616_v37  ;;  %v746_v8 = vadd.f32 %v3176_v34, %v3174_v6 }
 0x1b8   : > { %2484 = vpow2.f32 %v705_v54 }
 0x1b9   : > { %v3182_v9 = vpop.eup %2474  ;;  %v707_v41 = vmul.f32 1.442695, %v649_v40  ;;  %v709_v42 = vmul.f32 1.442695, %v650_v43  ;;  %747 = vadd.xlane.f32.xlu1 %v746_v8 }
 0x1ba   : > { %v3184_v58 = vpop.eup %2476  ;;  %v619_v56 = vpop.xlane.xlu0 %618 }
 0x1bb   : > { %2486 = vpow2.f32 %v707_v41  ;;  %v651_v57 = vsub.f32 %v3082_v14, %v619_v56  ;;  %v652_v61 = vsub.f32 %v3084_v15, %v619_v56  ;;  %v749_v11 = vadd.f32 %v3184_v58, %v3182_v9 }
 0x1bc   : > { %2488 = vpow2.f32 %v709_v42 }
 0x1bd   : > { %v3190_v12 = vpop.eup %2478  ;;  %v711_v45 = vmul.f32 1.442695, %v651_v57  ;;  %v713_v1 = vmul.f32 1.442695, %v652_v61  ;;  %750 = vadd.xlane.f32.xlu0 %v749_v11 }
 0x1be   : > { %v3192_v10 = vpop.eup %2480  ;;  %v622_v16 = vpop.xlane.xlu1 %621 }
 0x1bf   : > { %2490 = vpow2.f32 %v711_v45  ;;  %v653_v59 = vsub.f32 %v3088_v17, %v622_v16  ;;  %v654_v60 = vsub.f32 %v3090_v18, %v622_v16  ;;  %v752_v14 = vadd.f32 %v3192_v10, %v3190_v12 }
 0x1c0   : > { %2492 = vpow2.f32 %v713_v1 }
 0x1c1   : > { %v3198_v15 = vpop.eup %2482  ;;  %v715_v47 = vmul.f32 1.442695, %v653_v59  ;;  %v717_v48 = vmul.f32 1.442695, %v654_v60  ;;  %753 = vadd.xlane.f32.xlu1 %v752_v14 }
 0x1c2   : > { %v3200_v21 = vpop.eup %2484 }
 0x1c3   : > { %2494 = vpow2.f32 %v715_v47  ;;  %v755_v22 = vadd.f32 %v3200_v21, %v3198_v15 }
 0x1c4   : > { %2496 = vpow2.f32 %v717_v48 }
 0x1c5   : > { %v3204_v23 = vpop.eup %2486  ;;  %756 = vadd.xlane.f32.xlu0 %v755_v22 }
 0x1c6   : > { %v3206_v17 = vpop.eup %2488 }
 0x1c7   : > { %v758_v18 = vadd.f32 %v3206_v17, %v3204_v23 }
 0x1c9   : > { %v3210_v62 = vpop.eup %2490  ;;  %759 = vadd.xlane.f32.xlu1 %v758_v18 }
 0x1ca   : > { %v3212_v25 = vpop.eup %2492 }
 0x1cb   : > { %v761_v26 = vadd.f32 %v3212_v25, %v3210_v62 }
 0x1cd   : > { %v3216_v35 = vpop.eup %2494  ;;  %762 = vadd.xlane.f32.xlu0 %v761_v26 }
 0x1ce   : > { %v3218_v50 = vpop.eup %2496 }
 0x1cf   : > { %v764_v51 = vadd.f32 %v3218_v50, %v3216_v35 }
 0x1d1   : > { %765 = vadd.xlane.f32.xlu1 %v764_v51 }
 0x222   : > { %v721_v2 = vpop.xlane.xlu0 %720 }
 0x223   : > { %2498 = vrcp.f32 %v721_v2 }
 0x226   : > { %v724_v36 = vpop.xlane.xlu1 %723 }
 0x227   : > { %2500 = vrcp.f32 %v724_v36 }
 0x22a   : > { %v727_v29 = vpop.xlane.xlu0 %726 }
 0x22b   : > { %2502 = vrcp.f32 %v727_v29 }
 0x22d   : > { %v2499_v38 = vpop.eup %2498 }
 0x22e   : > { %v799_v39 = vmul.f32 %v2499_v38, %v3102_v49  ;;  %v730_v33 = vpop.xlane.xlu1 %729  ;;  %v800_v5 = vmul.f32 %v2499_v38, %v3104_v52 }
 0x22f   : > { %2504 = vrcp.f32 %v730_v33 }
 0x230   : > { %1120 = vmatprep.mubr.f32.mxu0 %v800_v5 }
 0x231   : > { %v2501_v53 = vpop.eup %2500  ;;  %1121 = vmatmul.mubr.f32.vlgmr.msra.gmra.mrb[32].mxu0 %v799_v39 }
 0x232   : > { %v733_v54 = vpop.xlane.xlu0 %732  ;;  %v802_v37 = vmul.f32 %v2501_v53, %v3112_v13  ;;  %v801_v40 = vmul.f32 %v2501_v53, %v3110_v4 }
 0x233   : > { %2506 = vrcp.f32 %v733_v54 }
 0x234   : > { %1125 = vmatprep.mubr.f32.mxu0 %v802_v37 }
 0x235   : > { %v2503_v43 = vpop.eup %2502  ;;  %1126 = vmatmul.mubr.f32.gmra.mrb[34].mxu0 %v801_v40 }
 0x236   : > { %v736_v8 = vpop.xlane.xlu1 %735  ;;  %v804_v41 = vmul.f32 %v2503_v43, %v3120_v27  ;;  %v803_v49 = vmul.f32 %v2503_v43, %v3118_v24 }
 0x237   : > { %2508 = vrcp.f32 %v736_v8 }
 0x238   : > { %1130 = vmatprep.mubr.f32.mxu0 %v804_v41  ;;  %v3272_v41 = vld [vmem:[%s3821_s1 + $0x10] sm:$0xff] }
 0x239   : > { %v2505_v52 = vpop.eup %2504  ;;  %1131 = vmatmul.mubr.f32.gmra.mrb[36].mxu0 %v803_v49  ;;  %v3277_v49 = vld [vmem:[%s3821_s1 + $0x18] sm:$0xff] }
 0x23a   : > { %v739_v42 = vpop.xlane.xlu0 %738  ;;  %v806_v56 = vmul.f32 %v2505_v52, %v3128_v32  ;;  %v805_v13 = vmul.f32 %v2505_v52, %v3126_v30 }
 0x23b   : > { %2510 = vrcp.f32 %v739_v42 }
 0x23c   : > { %1135 = vmatprep.mubr.f32.mxu0 %v806_v56 }
 0x23d   : > { %v2507_v4 = vpop.eup %2506  ;;  %1136 = vmatmul.mubr.f32.gmra.mrb[38].mxu0 %v805_v13 }
 0x23e   : > { %v742_v57 = vpop.xlane.xlu1 %741  ;;  %v808_v61 = vmul.f32 %v2507_v4, %v3136_v55  ;;  %v807_v27 = vmul.f32 %v2507_v4, %v3134_v46 }
 0x23f   : > { %2512 = vrcp.f32 %v742_v57 }
 0x240   : > { %1140 = vmatprep.mubr.f32.mxu0 %v808_v61 }
 0x241   : > { %v2509_v24 = vpop.eup %2508  ;;  %1141 = vmatmul.mubr.f32.gmra.mrb[40].mxu0 %v807_v27  ;;  %v3285_v27 = vld [vmem:[%s3821_s1 + $0x20] sm:$0xff] }
 0x242   : > { %v745_v11 = vpop.xlane.xlu0 %744  ;;  %v810_v45 = vmul.f32 %v2509_v24, %v3144_v7  ;;  %v809_v32 = vmul.f32 %v2509_v24, %v3142_v44  ;;  %v3290_v24 = vld [vmem:[%s3821_s1 + $0x28] sm:$0xff] }
 0x243   : > { %2514 = vrcp.f32 %v745_v11 }
 0x244   : > { %1145 = vmatprep.mubr.f32.mxu0 %v810_v45 }
 0x245   : > { %v2511_v30 = vpop.eup %2510  ;;  %1146 = vmatmul.mubr.f32.gmra.mrb[42].mxu0 %v809_v32 }
 0x246   : > { %v748_v1 = vpop.xlane.xlu1 %747  ;;  %v812_v16 = vmul.f32 %v2511_v30, %v3152_v20  ;;  %v811_v55 = vmul.f32 %v2511_v30, %v3150_v19 }
 0x247   : > { %2516 = vrcp.f32 %v748_v1 }
 0x248   : > { %1150 = vmatprep.mubr.f32.mxu0 %v812_v16 }
 0x249   : > { %v2513_v46 = vpop.eup %2512  ;;  %1151 = vmatmul.mubr.f32.gmra.mrb[44].mxu0 %v811_v55 }
 0x24a   : > { %v751_v59 = vpop.xlane.xlu0 %750  ;;  %v814_v60 = vmul.f32 %v2513_v46, %v3160_v28  ;;  %v813_v7 = vmul.f32 %v2513_v46, %v3158_v63  ;;  %v3298_v46 = vld [vmem:[%s3821_s1 + $0x30] sm:$0xff] }
 0x24b   : > { %2518 = vrcp.f32 %v751_v59  ;;  %v3303_v59 = vld [vmem:[%s3821_s1 + $0x38] sm:$0xff] }
 0x24c   : > { %1155 = vmatprep.mubr.f32.mxu0 %v814_v60 }
 0x24d   : > { %v2515_v44 = vpop.eup %2514  ;;  %1156 = vmatmul.mubr.f32.gmra.mrb[46].mxu0 %v813_v7 }
 0x24e   : > { %v754_v14 = vpop.xlane.xlu1 %753  ;;  %v816_v47 = vmul.f32 %v2515_v44, %v3168_v31  ;;  %v815_v20 = vmul.f32 %v2515_v44, %v3166_v3 }
 0x24f   : > { %2520 = vrcp.f32 %v754_v14 }
 0x250   : > { %1160 = vmatprep.mubr.f32.mxu0 %v816_v47 }
 0x251   : > { %v2517_v19 = vpop.eup %2516  ;;  %1161 = vmatmul.mubr.f32.gmra.mrb[48].mxu0 %v815_v20 }
 0x252   : > { %v757_v48 = vpop.xlane.xlu0 %756  ;;  %v818_v22 = vmul.f32 %v2517_v19, %v3176_v34  ;;  %v817_v28 = vmul.f32 %v2517_v19, %v3174_v6 }
 0x253   : > { %2522 = vrcp.f32 %v757_v48  ;;  %v3311_v48 = vld [vmem:[%s3821_s1 + $0x40] sm:$0xff] }
 0x254   : > { %1165 = vmatprep.mubr.f32.mxu0 %v818_v22  ;;  %v3316_v22 = vld [vmem:[%s3821_s1 + $0x48] sm:$0xff] }
 0x255   : > { %v2519_v63 = vpop.eup %2518  ;;  %1166 = vmatmul.mubr.f32.gmra.mrb[50].mxu0 %v817_v28 }
 0x256   : > { %v760_v18 = vpop.xlane.xlu1 %759  ;;  %v820_v26 = vmul.f32 %v2519_v63, %v3184_v58  ;;  %v819_v31 = vmul.f32 %v2519_v63, %v3182_v9 }
 0x257   : > { %2524 = vrcp.f32 %v760_v18 }
 0x258   : > { %1170 = vmatprep.mubr.f32.mxu0 %v820_v26 }
 0x259   : > { %v2521_v3 = vpop.eup %2520  ;;  %1171 = vmatmul.mubr.f32.gmra.mrb[52].mxu0 %v819_v31 }
 0x25a   : > { %v763_v51 = vpop.xlane.xlu0 %762  ;;  %v822_v2 = vmul.f32 %v2521_v3, %v3192_v10  ;;  %v821_v34 = vmul.f32 %v2521_v3, %v3190_v12 }
 0x25b   : > { %2526 = vrcp.f32 %v763_v51 }
 0x25c   : > { %1175 = vmatprep.mubr.f32.mxu0 %v822_v2  ;;  %v3324_v2 = vld [vmem:[%s3821_s1 + $0x50] sm:$0xff] }
 0x25d   : > { %v2523_v6 = vpop.eup %2522  ;;  %1176 = vmatmul.mubr.f32.gmra.mrb[54].mxu0 %v821_v34  ;;  %v3329_v34 = vld [vmem:[%s3821_s1 + $0x58] sm:$0xff] }
 0x25e   : > { %v766_v36 = vpop.xlane.xlu1 %765  ;;  %v824_v29 = vmul.f32 %v2523_v6, %v3200_v21  ;;  %v823_v58 = vmul.f32 %v2523_v6, %v3198_v15  ;;  %3839 = vst [vmem:[#allocation5_spill] sm:$0xff] %v3329_v34 }
 0x25f   : > { %2528 = vrcp.f32 %v766_v36 }
 0x260   : > { %1180 = vmatprep.mubr.f32.mxu0 %v824_v29 }
 0x261   : > { %v2525_v9 = vpop.eup %2524  ;;  %1181 = vmatmul.mubr.f32.gmra.mrb[56].mxu0 %v823_v58 }
 0x262   : > { %v826_v38 = vmul.f32 %v2525_v9, %v3206_v17  ;;  %v825_v39 = vmul.f32 %v2525_v9, %v3204_v23  ;;  %v2727_v17 = vmov 0.0|0.0  }
 0x263   : > { %2295 = vmatprep.subr.bf16.mxu1 %v2727_v17 }
 0x264   : > { %1185 = vmatprep.mubr.f32.mxu0 %v826_v38 }
 0x265   : > { %v2527_v10 = vpop.eup %2526  ;;  %1186 = vmatmul.mubr.f32.gmra.mrb[58].mxu0 %v825_v39 }
 0x266   : > { %v828_v12 = vmul.f32 %v2527_v10, %v3212_v25  ;;  %v827_v33 = vmul.f32 %v2527_v10, %v3210_v62  ;;  %v3260_v62 = vld [vmem:[%s3821_s1] sm:$0xff] }
 0x267   : > { %v3337_v10 = vld [vmem:[%s3821_s1 + $0x60] sm:$0xff] }
 0x268   : > { %1190 = vmatprep.mubr.f32.mxu0 %v828_v12  ;;  %3840 = vst [vmem:[#allocation6_spill] sm:$0xff] %v3337_v10  ;;  %v3342_v12 = vld [vmem:[%s3821_s1 + $0x68] sm:$0xff] }
 0x269   : > { %v2529_v5 = vpop.eup %2528  ;;  %1191 = vmatmul.mubr.f32.gmra.mrb[60].mxu0 %v827_v33  ;;  %3841 = vst [vmem:[#allocation7_spill] sm:$0xff] %v3342_v12 }
 0x26a   : > { %v830_v15 = vmul.f32 %v2529_v5, %v3218_v50  ;;  %v829_v21 = vmul.f32 %v2529_v5, %v3216_v35  ;;  %v3265_v35 = vld [vmem:[%s3821_s1 + $0x8] sm:$0xff] }
 0x26c   : > { %1195 = vmatprep.mubr.f32.mxu0 %v830_v15 }
 0x26d   : > { %1196 = vmatmul.mubr.f32.gmra.mrb[62].mxu0 %v829_v21 }
 0x26e   : > { %1715 = vmatprep.mubr.f32.mxu0 %v3830_v0 }
 0x304   : > { %v1122_v23 = vpop.f32.mrb[32].mxu0 }
 0x305   : > { %v1124_v25 = vpop.f32.mrb[33].mxu0  ;;  %v1201_v53 = vmul.f32 %v1122_v23, %v3260_v62 }
 0x308   : > { %v1127_v50 = vpop.f32.mrb[34].mxu0 }
 0x309   : > { %v1202_v54 = vmul.f32 %v1127_v50, %v3265_v35  ;;  %v1129_v37 = vpop.f32.mrb[35].mxu0 }
 0x30b   : > { %v2296_v40 = vpack.c.bf16 %v1202_v54, %v1201_v53  ;;  %v3350_v53 = vld [vmem:[%s3821_s1 + $0x70] sm:$0xff]  ;;  %v3355_v54 = vld [vmem:[%s3821_s1 + $0x78] sm:$0xff] }
 0x30c   : > { %v1132_v43 = vpop.f32.mrb[36].mxu0  ;;  %3842 = vst [vmem:[#allocation8_spill] sm:$0xff] %v3350_v53  ;;  %3843 = vst [vmem:[#allocation9_spill] sm:$0xff] %v3355_v54 }
 0x30d   : > { %v1134_v8 = vpop.f32.mrb[37].mxu0  ;;  %2297 = vmatpush3.bf16.xpose.msra.mxu1 %v2296_v40  ;;  %v1203_v42 = vmul.f32 %v1132_v43, %v3272_v41 }
 0x30e   : > { %2298 = vmatprep.subr.bf16.mxu1 %v2727_v17 }
 0x310   : > { %v1137_v52 = vpop.f32.mrb[38].mxu0 }
 0x311   : > { %v1204_v56 = vmul.f32 %v1137_v52, %v3277_v49  ;;  %v1139_v13 = vpop.f32.mrb[39].mxu0 }
 0x312   : > { %v2661_v13 = vld [vmem:[%s2836_s25] sm:$0xff] }
 0x313   : > { %v2299_v4 = vpack.c.bf16 %v1204_v56, %v1203_v42  ;;  %v2660_v42 = vld [vmem:[%s2836_s25 + $0x8] sm:$0xff]  ;;  %v1217_v56 = vld [vmem:[%s3825_s5] sm:$0xff] }
 0x314   : > { %v1142_v57 = vpop.f32.mrb[40].mxu0 }
 0x315   : > { %v1144_v61 = vpop.f32.mrb[41].mxu0  ;;  %2300 = vmatpush3.bf16.xpose.msra.mxu1 %v2299_v4  ;;  %v1205_v45 = vmul.f32 %v1142_v57, %v3285_v27  ;;  %v1289_v4 = vld [vmem:[%s3822_s2 + $0x8] sm:$0xff]  ;;  %v1290_v57 = vld [vmem:[%s3822_s2 + $0x10] sm:$0xff] }
 0x316   : > { %2301 = vmatprep.subr.bf16.mxu1 %v2727_v17  ;;  %v1291_v61 = vld [vmem:[%s3822_s2 + $0x18] sm:$0xff] }
 0x318   : > { %v1147_v11 = vpop.f32.mrb[42].mxu0 }
 0x319   : > { %v1206_v32 = vmul.f32 %v1147_v11, %v3290_v24  ;;  %v1149_v30 = vpop.f32.mrb[43].mxu0  ;;  %v1292_v11 = vld [vmem:[%s3822_s2 + $0x20] sm:$0xff] }
 0x31a   : > { %v1295_v30 = vld [vmem:[%s3822_s2 + $0x38] sm:$0xff] }
 0x31b   : > { %v2302_v1 = vpack.c.bf16 %v1206_v32, %v1205_v45  ;;  %v1293_v45 = vld [vmem:[%s3822_s2 + $0x28] sm:$0xff]  ;;  %v1294_v32 = vld [vmem:[%s3822_s2 + $0x30] sm:$0xff] }
 0x31c   : > { %v1152_v16 = vpop.f32.mrb[44].mxu0 }
 0x31d   : > { %v1154_v55 = vpop.f32.mrb[45].mxu0  ;;  %2303 = vmatpush3.bf16.xpose.msra.mxu1 %v2302_v1  ;;  %v1207_v7 = vmul.f32 %v1152_v16, %v3298_v46  ;;  %v1296_v1 = vld [vmem:[%s3822_s2 + $0x40] sm:$0xff]  ;;  %v1297_v16 = vld [vmem:[%s3822_s2 + $0x48] sm:$0xff] }
 0x31e   : > { %2304 = vmatprep.subr.bf16.mxu1 %v2727_v17  ;;  %v1298_v55 = vld [vmem:[%s3822_s2 + $0x50] sm:$0xff] }
 0x320   : > { %v1157_v60 = vpop.f32.mrb[46].mxu0 }
 0x321   : > { %v1208_v44 = vmul.f32 %v1157_v60, %v3303_v59  ;;  %v1159_v14 = vpop.f32.mrb[47].mxu0  ;;  %v1299_v60 = vld [vmem:[%s3822_s2 + $0x58] sm:$0xff] }
 0x322   : > { %v1302_v14 = vld [vmem:[%s3822_s2 + $0x70] sm:$0xff] }
 0x323   : > { %v2305_v47 = vpack.c.bf16 %v1208_v44, %v1207_v7  ;;  %v1300_v7 = vld [vmem:[%s3822_s2 + $0x60] sm:$0xff]  ;;  %v1301_v44 = vld [vmem:[%s3822_s2 + $0x68] sm:$0xff] }
 0x324   : > { %v1162_v20 = vpop.f32.mrb[48].mxu0 }
 0x325   : > { %v1164_v19 = vpop.f32.mrb[49].mxu0  ;;  %2306 = vmatpush3.bf16.xpose.msra.mxu1 %v2305_v47  ;;  %v1209_v63 = vmul.f32 %v1162_v20, %v3311_v48  ;;  %v1303_v47 = vld [vmem:[%s3822_s2 + $0x78] sm:$0xff] }
 0x326   : > { %2307 = vmatprep.subr.bf16.mxu1 %v2727_v17 }
 0x328   : > { %v1167_v28 = vpop.f32.mrb[50].mxu0 }
 0x329   : > { %v1210_v18 = vmul.f32 %v1167_v28, %v3316_v22  ;;  %v1169_v26 = vpop.f32.mrb[51].mxu0 }
 0x32b   : > { %v2308_v31 = vpack.c.bf16 %v1210_v18, %v1209_v63 }
 0x32c   : > { %v1172_v3 = vpop.f32.mrb[52].mxu0 }
 0x32d   : > { %v1174_v51 = vpop.f32.mrb[53].mxu0  ;;  %2309 = vmatpush3.bf16.xpose.msra.mxu1 %v2308_v31  ;;  %v1211_v36 = vmul.f32 %v1172_v3, %v3324_v2 }
 0x32e   : > { %2310 = vmatprep.subr.bf16.mxu1 %v2727_v17 }
 0x330   : > { %v1177_v6 = vpop.f32.mrb[54].mxu0 }
 0x331   : > { %v1212_v29 = vmul.f32 %v1177_v6, %v3329_v34  ;;  %v1179_v58 = vpop.f32.mrb[55].mxu0 }
 0x333   : > { %v2311_v9 = vpack.c.bf16 %v1212_v29, %v1211_v36 }
 0x334   : > { %v1182_v38 = vpop.f32.mrb[56].mxu0 }
 0x335   : > { %v1184_v39 = vpop.f32.mrb[57].mxu0  ;;  %2312 = vmatpush3.bf16.xpose.msra.mxu1 %v2311_v9  ;;  %v1213_v5 = vmul.f32 %v1182_v38, %v3337_v10 }
 0x336   : > { %2313 = vmatprep.subr.bf16.mxu1 %v2727_v17 }
 0x338   : > { %v1187_v33 = vpop.f32.mrb[58].mxu0 }
 0x339   : > { %v1214_v15 = vmul.f32 %v1187_v33, %v3342_v12  ;;  %v1189_v21 = vpop.f32.mrb[59].mxu0 }
 0x33b   : > { %v2314_v23 = vpack.c.bf16 %v1214_v15, %v1213_v5 }
 0x33c   : > { %v1192_v25 = vpop.f32.mrb[60].mxu0 }
 0x33d   : > { %v1194_v50 = vpop.f32.mrb[61].mxu0  ;;  %2315 = vmatpush3.bf16.xpose.msra.mxu1 %v2314_v23  ;;  %v1215_v40 = vmul.f32 %v1192_v25, %v3350_v53 }
 0x33e   : > { %2316 = vmatprep.subr.bf16.mxu1 %v2727_v17  ;;  %v1288_v17 = vld [vmem:[%s3822_s2] sm:$0xff] }
 0x340   : > { %v1197_v37 = vpop.f32.mrb[62].mxu0 }
 0x341   : > { %v1216_v43 = vmul.f32 %v1197_v37, %v3355_v54  ;;  %v1199_v8 = vpop.f32.mrb[63].mxu0 }
 0x343   : > { %v2317_v52 = vpack.c.bf16 %v1216_v43, %v1215_v40 }
 0x345   : > { %2318 = vmatpush3.bf16.xpose.msra.mxu1 %v2317_v52 }
 0x346   : > { %1352 = vmatprep.subr.mxu1 %v2660_v42 }
 0x34c   : > { %2261 = vmatmul.mubr.f32.vlgmr.msra.gmra.mrb[32].mxu1 %v1217_v56 }
 0x34d   : > { %1353 = vmatpush1.msra.mxu1 %v2661_v13  ;;  %1416 = vmatprep.mubr.f32.mxu1 %v3830_v0 }
 0x350   : > { %2188 = vmatmul.mubr.msk.f32.vlgmr.msra.gmra.mrb[34].mxu1 %vm365_vm0, %v1288_v17 }
 0x351   : > { %1422 = vmatprep.mubr.f32.mxu1 %v3830_v0 }
 0x354   : > { %2189 = vmatmul.mubr.msk.f32.gmra.mrb[36].mxu1 %vm365_vm0, %v1289_v4 }
 0x355   : > { %1428 = vmatprep.mubr.f32.mxu1 %v3830_v0 }
 0x358   : > { %2190 = vmatmul.mubr.msk.f32.gmra.mrb[38].mxu1 %vm365_vm0, %v1290_v57 }
 0x359   : > { %1434 = vmatprep.mubr.f32.mxu1 %v3830_v0 }
 0x35c   : > { %2191 = vmatmul.mubr.msk.f32.gmra.mrb[40].mxu1 %vm365_vm0, %v1291_v61 }
 0x35d   : > { %1440 = vmatprep.mubr.f32.mxu1 %v3830_v0 }
 0x360   : > { %2192 = vmatmul.mubr.msk.f32.gmra.mrb[42].mxu1 %vm365_vm0, %v1292_v11 }
 0x361   : > { %1446 = vmatprep.mubr.f32.mxu1 %v3830_v0 }
 0x364   : > { %2193 = vmatmul.mubr.msk.f32.gmra.mrb[44].mxu1 %vm365_vm0, %v1293_v45 }
 0x365   : > { %1452 = vmatprep.mubr.f32.mxu1 %v3830_v0 }
 0x368   : > { %2194 = vmatmul.mubr.msk.f32.gmra.mrb[46].mxu1 %vm365_vm0, %v1294_v32 }
 0x369   : > { %1458 = vmatprep.mubr.f32.mxu1 %v3830_v0 }
 0x36c   : > { %2195 = vmatmul.mubr.msk.f32.gmra.mrb[48].mxu1 %vm365_vm0, %v1295_v30 }
 0x36d   : > { %1464 = vmatprep.mubr.f32.mxu1 %v3830_v0 }
 0x370   : > { %2196 = vmatmul.mubr.msk.f32.gmra.mrb[50].mxu1 %vm365_vm0, %v1296_v1 }
 0x371   : > { %1470 = vmatprep.mubr.f32.mxu1 %v3830_v0 }
 0x374   : > { %2197 = vmatmul.mubr.msk.f32.gmra.mrb[52].mxu1 %vm365_vm0, %v1297_v16 }
 0x375   : > { %1476 = vmatprep.mubr.f32.mxu1 %v3830_v0 }
 0x378   : > { %2198 = vmatmul.mubr.msk.f32.gmra.mrb[54].mxu1 %vm365_vm0, %v1298_v55 }
 0x379   : > { %1482 = vmatprep.mubr.f32.mxu1 %v3830_v0 }
 0x37c   : > { %2199 = vmatmul.mubr.msk.f32.gmra.mrb[56].mxu1 %vm365_vm0, %v1299_v60 }
 0x37d   : > { %1488 = vmatprep.mubr.f32.mxu1 %v3830_v0 }
 0x380   : > { %2200 = vmatmul.mubr.msk.f32.gmra.mrb[58].mxu1 %vm365_vm0, %v1300_v7 }
 0x381   : > { %1494 = vmatprep.mubr.f32.mxu1 %v3830_v0 }
 0x384   : > { %2201 = vmatmul.mubr.msk.f32.gmra.mrb[60].mxu1 %vm365_vm0, %v1301_v44 }
 0x385   : > { %1500 = vmatprep.mubr.f32.mxu1 %v3830_v0 }
 0x388   : > { %2202 = vmatmul.mubr.msk.f32.gmra.mrb[62].mxu1 %vm365_vm0, %v1302_v14 }
 0x389   : > { %1506 = vmatprep.mubr.f32.mxu1 %v3830_v0 }
 0x38c   : > { %2203 = vmatmul.mubr.msk.f32.gmra.mrb[64].mxu1 %vm365_vm0, %v1303_v47 }
 0x38d   : > { %2010 = vmatprep.mubr.f32.mxu1 %v3830_v0 }
 0x41f   : > { %v3446_v20 = vpop.f32.mrb[32].mxu1 }
 0x420   : > { %3844 = vst [vmem:[#allocation10_spill] sm:$0xff] %v3446_v20  ;;  %v2262_v19 = vpop.f32.mrb[33].mxu1 }
 0x423   : > { %v3448_v28 = vpop.f32.mrb[34].mxu1 }
 0x424   : > { %v3450_v63 = vpop.f32.mrb[35].mxu1 }
 0x427   : > { %v3452_v18 = vpop.f32.mrb[36].mxu1 }
 0x428   : > { %v3454_v26 = vpop.f32.mrb[37].mxu1 }
 0x42b   : > { %v3456_v31 = vpop.f32.mrb[38].mxu1 }
 0x42c   : > { %v1513_v3 = vmax.f32 %v3448_v28, %v3456_v31  ;;  %v3460_v51 = vpop.f32.mrb[39].mxu1 }
 0x42d   : > { %v1534_v6 = vmax.f32 %v3450_v63, %v3460_v51 }
 0x42f   : > { %v3464_v36 = vpop.f32.mrb[40].mxu1 }
 0x430   : > { %v1514_v29 = vmax.f32 %v3452_v18, %v3464_v36  ;;  %v3468_v58 = vpop.f32.mrb[41].mxu1 }
 0x431   : > { %v1535_v9 = vmax.f32 %v3454_v26, %v3468_v58 }
 0x433   : > { %v3472_v38 = vpop.f32.mrb[42].mxu1 }
 0x434   : > { %v1515_v39 = vmax.f32 %v1513_v3, %v3472_v38  ;;  %v3475_v33 = vpop.f32.mrb[43].mxu1 }
 0x435   : > { %v1536_v5 = vmax.f32 %v1534_v6, %v3475_v33 }
 0x437   : > { %v3478_v15 = vpop.f32.mrb[44].mxu1 }
 0x438   : > { %v1516_v21 = vmax.f32 %v1514_v29, %v3478_v15  ;;  %v3481_v23 = vpop.f32.mrb[45].mxu1 }
 0x439   : > { %v1537_v25 = vmax.f32 %v1535_v9, %v3481_v23 }
 0x43b   : > { %v3484_v50 = vpop.f32.mrb[46].mxu1 }
 0x43c   : > { %v1517_v37 = vmax.f32 %v1515_v39, %v3484_v50  ;;  %v3487_v40 = vpop.f32.mrb[47].mxu1 }
 0x43d   : > { %v1538_v43 = vmax.f32 %v1536_v5, %v3487_v40 }
 0x43f   : > { %v3490_v8 = vpop.f32.mrb[48].mxu1 }
 0x440   : > { %v1518_v52 = vmax.f32 %v1516_v21, %v3490_v8  ;;  %v3493_v42 = vpop.f32.mrb[49].mxu1 }
 0x441   : > { %v1539_v56 = vmax.f32 %v1537_v25, %v3493_v42 }
 0x443   : > { %v3496_v13 = vpop.f32.mrb[50].mxu1 }
 0x444   : > { %v1519_v17 = vmax.f32 %v1517_v37, %v3496_v13  ;;  %v3499_v4 = vpop.f32.mrb[51].mxu1 }
 0x445   : > { %v1540_v57 = vmax.f32 %v1538_v43, %v3499_v4 }
 0x447   : > { %v3502_v61 = vpop.f32.mrb[52].mxu1 }
 0x448   : > { %v1520_v11 = vmax.f32 %v1518_v52, %v3502_v61  ;;  %v3505_v45 = vpop.f32.mrb[53].mxu1 }
 0x449   : > { %v1541_v32 = vmax.f32 %v1539_v56, %v3505_v45 }
 0x44b   : > { %v3508_v30 = vpop.f32.mrb[54].mxu1 }
 0x44c   : > { %v1521_v1 = vmax.f32 %v1519_v17, %v3508_v30  ;;  %v3511_v16 = vpop.f32.mrb[55].mxu1 }
 0x44d   : > { %v1542_v55 = vmax.f32 %v1540_v57, %v3511_v16 }
 0x44f   : > { %v3514_v60 = vpop.f32.mrb[56].mxu1 }
 0x450   : > { %v1522_v7 = vmax.f32 %v1520_v11, %v3514_v60  ;;  %v3517_v44 = vpop.f32.mrb[57].mxu1 }
 0x451   : > { %v1543_v14 = vmax.f32 %v1541_v32, %v3517_v44 }
 0x453   : > { %v3520_v47 = vpop.f32.mrb[58].mxu1 }
 0x454   : > { %v1523_v19 = vmax.f32 %v1521_v1, %v3520_v47  ;;  %v3523_v3 = vpop.f32.mrb[59].mxu1 }
 0x455   : > { %v1544_v6 = vmax.f32 %v1542_v55, %v3523_v3 }
 0x457   : > { %v3526_v29 = vpop.f32.mrb[60].mxu1 }
 0x458   : > { %v1524_v9 = vmax.f32 %v1522_v7, %v3526_v29  ;;  %v3529_v39 = vpop.f32.mrb[61].mxu1 }
 0x459   : > { %v1545_v5 = vmax.f32 %v1543_v14, %v3529_v39 }
 0x45b   : > { %v3532_v21 = vpop.f32.mrb[62].mxu1 }
 0x45c   : > { %v1525_v25 = vmax.f32 %v1523_v19, %v3532_v21  ;;  %v3535_v37 = vpop.f32.mrb[63].mxu1 }
 0x45d   : > { %v1546_v43 = vmax.f32 %v1544_v6, %v3535_v37 }
 0x45f   : > { %v1508_v52 = vpop.f32.mrb[64].mxu1 }
 0x460   : > { %v1526_v56 = vmax.f32 %v1524_v9, %v1508_v52  ;;  %v1510_v17 = vpop.f32.mrb[65].mxu1 }
 0x461   : > { %v1547_v57 = vmax.f32 %v1545_v5, %v1510_v17 }
 0x462   : > { %v1527_v11 = vmax.f32 %v1525_v25, %v1526_v56 }
 0x463   : > { %v1548_v32 = vmax.f32 %v1546_v43, %v1547_v57 }
 0x464   : > { %v1528_v1 = vrot.slane %v1527_v11, 4 }
 0x465   : > { %v1549_v55 = vrot.slane %v1548_v32, 4 }
 0x466   : > { %v1529_v7 = vmax.f32 %v1527_v11, %v1528_v1 }
 0x467   : > { %v1550_v0 = vmax.f32 %v1548_v32, %v1549_v55 }
 0x468   : > { %v1530_v20 = vrot.slane %v1529_v7, 2 }
 0x469   : > { %v1551_v14 = vrot.slane %v1550_v0, 2 }
 0x46a   : > { %v1531_v54 = vmax.f32 %v1529_v7, %v1530_v20 }
 0x46b   : > { %v1552_v53 = vmax.f32 %v1550_v0, %v1551_v14 }
 0x46c   : > { %v1532_v12 = vrot.slane %v1531_v54, 1 }
 0x46d   : > { %v1553_v19 = vrot.slane %v1552_v53, 1 }
 0x46e   : > { %v3538_v10 = vmax.f32 %v1531_v54, %v1532_v12 }
 0x46f   : > { %v3540_v34 = vmax.f32 %v1552_v53, %v1553_v19 }
 0x470   : > { %v1585_v6 = vsub.f32 %v1508_v52, %v3538_v10  ;;  %v1555_v9 = vsub.f32 %v3448_v28, %v3538_v10  ;;  %v1557_v5 = vsub.f32 %v3452_v18, %v3538_v10  ;;  %v1559_v25 = vsub.f32 %v3456_v31, %v3538_v10 }
 0x471   : > { %v1586_v20 = vsub.f32 %v1510_v17, %v3540_v34  ;;  %v1556_v0 = vsub.f32 %v3450_v63, %v3540_v34  ;;  %v1558_v12 = vsub.f32 %v3454_v26, %v3540_v34  ;;  %v1560_v53 = vsub.f32 %v3460_v51, %v3540_v34 }
 0x472   : > { %v1647_v54 = vmul.f32 1.442695, %v1585_v6  ;;  %v1562_v28 = vsub.f32 %v3468_v58, %v3540_v34  ;;  %v1561_v31 = vsub.f32 %v3464_v36, %v3538_v10  ;;  %v1587_v56 = vmul.f32 1.442695, %v1555_v9 }
 0x473   : > { %v1649_v43 = vmul.f32 1.442695, %v1586_v20  ;;  %v1589_v18 = vmul.f32 1.442695, %v1556_v0  ;;  %v1593_v52 = vmul.f32 1.442695, %v1558_v12  ;;  %v1564_v26 = vsub.f32 %v3475_v33, %v3540_v34 }
 0x474   : > { %2530 = vpow2.f32 %v1647_v54  ;;  %v1591_v17 = vmul.f32 1.442695, %v1557_v5  ;;  %v1597_v63 = vmul.f32 1.442695, %v1560_v53  ;;  %v1566_v51 = vsub.f32 %v3481_v23, %v3540_v34 }
 0x475   : > { %2532 = vpow2.f32 %v1649_v43  ;;  %v1563_v58 = vsub.f32 %v3472_v38, %v3538_v10  ;;  %v1565_v57 = vsub.f32 %v3478_v15, %v3538_v10  ;;  %v1568_v36 = vsub.f32 %v3487_v40, %v3540_v34 }
 0x476   : > { %2534 = vpow2.f32 %v1589_v18  ;;  %v1601_v11 = vmul.f32 1.442695, %v1562_v28  ;;  %v1570_v32 = vsub.f32 %v3493_v42, %v3540_v34  ;;  %v1595_v33 = vmul.f32 1.442695, %v1559_v25 }
 0x477   : > { %2536 = vpow2.f32 %v1593_v52  ;;  %v1599_v1 = vmul.f32 1.442695, %v1561_v31  ;;  %v1605_v23 = vmul.f32 1.442695, %v1564_v26  ;;  %v1567_v55 = vsub.f32 %v3484_v50, %v3538_v10 }
 0x478   : > { %2538 = vpow2.f32 %v1587_v56  ;;  %v1569_v38 = vsub.f32 %v3490_v8, %v3538_v10  ;;  %v1572_v15 = vsub.f32 %v3499_v4, %v3540_v34  ;;  %v1574_v40 = vsub.f32 %v3505_v45, %v3540_v34 }
 0x479   : > { %2540 = vpow2.f32 %v1591_v17  ;;  %v1571_v42 = vsub.f32 %v3496_v13, %v3538_v10  ;;  %v1609_v7 = vmul.f32 1.442695, %v1566_v51  ;;  %v1573_v14 = vsub.f32 %v3502_v61, %v3538_v10 }
 0x47a   : > { %2542 = vpow2.f32 %v1597_v63  ;;  %v1603_v50 = vmul.f32 1.442695, %v1563_v58  ;;  %v1607_v19 = vmul.f32 1.442695, %v1565_v57  ;;  %v1613_v8 = vmul.f32 1.442695, %v1568_v36 }
 0x47b   : > { %2544 = vpow2.f32 %v1601_v11  ;;  %v1576_v6 = vsub.f32 %v3511_v16, %v3540_v34  ;;  %v1578_v4 = vsub.f32 %v3517_v44, %v3540_v34  ;;  %v1575_v13 = vsub.f32 %v3508_v30, %v3538_v10 }
 0x47c   : > { %2546 = vpow2.f32 %v1595_v33  ;;  %v1577_v61 = vsub.f32 %v3514_v60, %v3538_v10  ;;  %v1580_v9 = vsub.f32 %v3523_v3, %v3540_v34  ;;  %v1617_v25 = vmul.f32 1.442695, %v1570_v32 }
 0x47d   : > { %2548 = vpow2.f32 %v1599_v1  ;;  %v1582_v16 = vsub.f32 %v3529_v39, %v3540_v34  ;;  %v1611_v20 = vmul.f32 1.442695, %v1567_v55  ;;  %v1615_v0 = vmul.f32 1.442695, %v1569_v38 }
 0x47e   : > { %v3588_v45 = vpop.eup %2530  ;;  %2550 = vpow2.f32 %v1605_v23  ;;  %v1621_v30 = vmul.f32 1.442695, %v1572_v15  ;;  %v1579_v60 = vsub.f32 %v3520_v47, %v3538_v10  ;;  %v1581_v3 = vsub.f32 %v3526_v29, %v3538_v10 }
 0x47f   : > { %v3596_v5 = vpop.eup %2532  ;;  %2552 = vpow2.f32 %v1609_v7  ;;  %v1584_v54 = vsub.f32 %v3535_v37, %v3540_v34  ;;  %v1583_v28 = vsub.f32 %v3532_v21, %v3538_v10  ;;  %v1625_v18 = vmul.f32 1.442695, %v1574_v40 }
 0x480   : > { %v3600_v44 = vpop.eup %2534  ;;  %2554 = vpow2.f32 %v1603_v50  ;;  %v1619_v52 = vmul.f32 1.442695, %v1571_v42  ;;  %v1623_v56 = vmul.f32 1.442695, %v1573_v14  ;;  %v1629_v21 = vmul.f32 1.442695, %v1576_v6 }
 0x481   : > { %v3602_v12 = vpop.eup %2536  ;;  %2556 = vpow2.f32 %v1607_v19  ;;  %v1633_v17 = vmul.f32 1.442695, %v1578_v4  ;;  %v1627_v51 = vmul.f32 1.442695, %v1575_v13  ;;  %v1631_v57 = vmul.f32 1.442695, %v1577_v61 }
 0x482   : > { %v3608_v53 = vpop.eup %2538  ;;  %v2319_v39 = vpack.c.bf16 %v3602_v12, %v3600_v44  ;;  %2558 = vpow2.f32 %v1613_v8  ;;  %v1637_v32 = vmul.f32 1.442695, %v1580_v9  ;;  %v1641_v1 = vmul.f32 1.442695, %v1582_v16 }
 0x483   : > { %v3616_v43 = vpop.eup %2540  ;;  %2560 = vpow2.f32 %v1617_v25  ;;  %v1635_v38 = vmul.f32 1.442695, %v1579_v60  ;;  %v1639_v40 = vmul.f32 1.442695, %v1581_v3  ;;  %v1645_v14 = vmul.f32 1.442695, %v1584_v54 }
 0x484   : > { %v3618_v47 = vpop.eup %2542  ;;  %2320 = vmatprep.subr.bf16.mxu0 %v2319_v39  ;;  %v2321_v29 = vpack.c.bf16 %v3616_v43, %v3608_v53  ;;  %2562 = vpow2.f32 %v1611_v20  ;;  %v1643_v19 = vmul.f32 1.442695, %v1583_v28 }
 0x485   : > { %v3622_v31 = vpop.eup %2544  ;;  %2564 = vpow2.f32 %v1615_v0 }
 0x486   : > { %v3624_v34 = vpop.eup %2546  ;;  %2322 = vmatpush1.bf16.msra.mxu0 %v2321_v29  ;;  %v2323_v10 = vpack.c.bf16 %v3622_v31, %v3618_v47  ;;  %2566 = vpow2.f32 %v1621_v30 }
 0x487   : > { %v3628_v37 = vpop.eup %2548  ;;  %2568 = vpow2.f32 %v1625_v18 }
 0x488   : > { %v3630_v63 = vpop.eup %2550  ;;  %2324 = vmatprep.subr.bf16.mxu0 %v2323_v10  ;;  %v2325_v26 = vpack.c.bf16 %v3628_v37, %v3624_v34  ;;  %2570 = vpow2.f32 %v1619_v52 }
 0x489   : > { %v3634_v58 = vpop.eup %2552  ;;  %2572 = vpow2.f32 %v1623_v56 }
 0x48a   : > { %v3636_v36 = vpop.eup %2554  ;;  %2326 = vmatpush1.bf16.msra.mxu0 %v2325_v26  ;;  %v2327_v11 = vpack.c.bf16 %v3634_v58, %v3630_v63  ;;  %2574 = vpow2.f32 %v1629_v21  ;;  %v3845_v26 = vmov 0.0  }
 0x48b   : > { %v3640_v33 = vpop.eup %2556  ;;  %2576 = vpow2.f32 %v1633_v17 }
 0x48c   : > { %v3642_v23 = vpop.eup %2558  ;;  %2328 = vmatprep.subr.bf16.mxu0 %v2327_v11  ;;  %v2329_v55 = vpack.c.bf16 %v3640_v33, %v3636_v36  ;;  %2578 = vpow2.f32 %v1627_v51 }
 0x48d   : > { %v3646_v15 = vpop.eup %2560  ;;  %2580 = vpow2.f32 %v1631_v57 }
 0x48e   : > { %v3648_v42 = vpop.eup %2562  ;;  %2330 = vmatpush1.bf16.msra.mxu0 %v2329_v55  ;;  %v2331_v7 = vpack.c.bf16 %v3646_v15, %v3642_v23  ;;  %2582 = vpow2.f32 %v1637_v32 }
 0x48f   : > { %v3652_v50 = vpop.eup %2564  ;;  %2584 = vpow2.f32 %v1641_v1 }
 0x490   : > { %v3654_v8 = vpop.eup %2566  ;;  %2332 = vmatprep.subr.bf16.mxu0 %v2331_v7  ;;  %v2333_v6 = vpack.c.bf16 %v3652_v50, %v3648_v42  ;;  %2586 = vpow2.f32 %v1635_v38 }
 0x491   : > { %v3658_v4 = vpop.eup %2568  ;;  %2588 = vpow2.f32 %v1639_v40 }
 0x492   : > { %v3660_v13 = vpop.eup %2570  ;;  %2334 = vmatpush1.bf16.msra.mxu0 %v2333_v6  ;;  %v2335_v61 = vpack.c.bf16 %v3658_v4, %v3654_v8  ;;  %2590 = vpow2.f32 %v1645_v14 }
 0x493   : > { %v3664_v9 = vpop.eup %2572  ;;  %2592 = vpow2.f32 %v1643_v19 }
 0x494   : > { %v3666_v25 = vpop.eup %2574  ;;  %2336 = vmatprep.subr.bf16.mxu0 %v2335_v61  ;;  %v2337_v16 = vpack.c.bf16 %v3664_v9, %v3660_v13 }
 0x495   : > { %v3670_v20 = vpop.eup %2576 }
 0x496   : > { %v3672_v0 = vpop.eup %2578  ;;  %2338 = vmatpush1.bf16.msra.mxu0 %v2337_v16  ;;  %v2339_v30 = vpack.c.bf16 %v3670_v20, %v3666_v25 }
 0x497   : > { %v3676_v60 = vpop.eup %2580 }
 0x498   : > { %v3678_v3 = vpop.eup %2582  ;;  %2340 = vmatprep.subr.bf16.mxu0 %v2339_v30  ;;  %v2341_v39 = vpack.c.bf16 %v3676_v60, %v3672_v0 }
 0x499   : > { %v3682_v54 = vpop.eup %2584 }
 0x49a   : > { %v3684_v28 = vpop.eup %2586  ;;  %2342 = vmatpush1.bf16.msra.mxu0 %v2341_v39  ;;  %v2343_v18 = vpack.c.bf16 %v3682_v54, %v3678_v3 }
 0x49b   : > { %v3688_v29 = vpop.eup %2588 }
 0x49c   : > { %v3690_v52 = vpop.eup %2590  ;;  %2344 = vmatprep.subr.bf16.mxu0 %v2343_v18  ;;  %v2345_v56 = vpack.c.bf16 %v3688_v29, %v3684_v28 }
 0x49d   : > { %v3694_v10 = vpop.eup %2592  ;;  %v2347_v21 = vpack.c.bf16 %v3596_v5, %v3690_v52 }
 0x49e   : > { %2346 = vmatpush1.bf16.msra.mxu0 %v2345_v56  ;;  %v2349_v17 = vpack.c.bf16 %v3588_v45, %v3694_v10 }
 0x49f   : > { %2348 = vmatprep.subr.bf16.mxu0 %v2347_v21 }
 0x4a2   : > { %2350 = vmatpush1.bf16.msra.mxu0 %v2349_v17 }
 0x4a5   : > { %1716 = vmatmul.mubr.f32.vlgmr.msra.gmra.mrb[64].mxu0 %v3260_v62  ;;  %v3846_v62 = vld [vmem:[#allocation5_spill] sm:$0xff] }
 0x4a6   : > { %1721 = vmatprep.mubr.f32.mxu0 %v3845_v26 }
 0x4a9   : > { %1722 = vmatmul.mubr.f32.gmra.mrb[66].mxu0 %v3265_v35  ;;  %v3847_v35 = vld [vmem:[#allocation6_spill] sm:$0xff] }
 0x4aa   : > { %1727 = vmatprep.mubr.f32.mxu0 %v3845_v26 }
 0x4ad   : > { %1728 = vmatmul.mubr.f32.gmra.mrb[68].mxu0 %v3272_v41  ;;  %v3848_v41 = vld [vmem:[#allocation7_spill] sm:$0xff] }
 0x4ae   : > { %1733 = vmatprep.mubr.f32.mxu0 %v3845_v26 }
 0x4b1   : > { %1734 = vmatmul.mubr.f32.gmra.mrb[70].mxu0 %v3277_v49  ;;  %v3849_v49 = vld [vmem:[#allocation8_spill] sm:$0xff] }
 0x4b2   : > { %1739 = vmatprep.mubr.f32.mxu0 %v3845_v26 }
 0x4b5   : > { %1740 = vmatmul.mubr.f32.gmra.mrb[72].mxu0 %v3285_v27  ;;  %v3850_v27 = vld [vmem:[#allocation9_spill] sm:$0xff] }
 0x4b6   : > { %1745 = vmatprep.mubr.f32.mxu0 %v3845_v26 }
 0x4b9   : > { %1746 = vmatmul.mubr.f32.gmra.mrb[74].mxu0 %v3290_v24  ;;  %v1940_v24 = vld [vmem:[%s3826_s6] sm:$0xff] }
 0x4ba   : > { %1751 = vmatprep.mubr.f32.mxu0 %v3845_v26 }
 0x4bd   : > { %1752 = vmatmul.mubr.f32.gmra.mrb[76].mxu0 %v3298_v46  ;;  %v2729_v46 = vmov 0  }
 0x4be   : > { %1757 = vmatprep.mubr.f32.mxu0 %v3845_v26  ;;  %2432 = vset.pattern.permute.xlu0 %v2729_v46 }
 0x4bf   : > { %2433 = vset.pattern.permute.xlu1 %v2729_v46  ;;  %1943 = vperm.xlu0 %2432, %v1940_v24  }
 0x4c1   : > { %1758 = vmatmul.mubr.f32.gmra.mrb[78].mxu0 %v3303_v59 }
 0x4c2   : > { %1763 = vmatprep.mubr.f32.mxu0 %v3845_v26 }
 0x4c5   : > { %1764 = vmatmul.mubr.f32.gmra.mrb[80].mxu0 %v3311_v48 }
 0x4c6   : > { %1769 = vmatprep.mubr.f32.mxu0 %v3845_v26 }
 0x4c9   : > { %1770 = vmatmul.mubr.f32.gmra.mrb[82].mxu0 %v3316_v22 }
 0x4ca   : > { %1775 = vmatprep.mubr.f32.mxu0 %v3845_v26 }
 0x4cd   : > { %1776 = vmatmul.mubr.f32.gmra.mrb[84].mxu0 %v3324_v2 }
 0x4ce   : > { %1781 = vmatprep.mubr.f32.mxu0 %v3845_v26 }
 0x4d1   : > { %1782 = vmatmul.mubr.f32.gmra.mrb[86].mxu0 %v3846_v62 }
 0x4d2   : > { %1787 = vmatprep.mubr.f32.mxu0 %v3845_v26 }
 0x4d5   : > { %1788 = vmatmul.mubr.f32.gmra.mrb[88].mxu0 %v3847_v35 }
 0x4d6   : > { %1793 = vmatprep.mubr.f32.mxu0 %v3845_v26 }
 0x4d9   : > { %1794 = vmatmul.mubr.f32.gmra.mrb[90].mxu0 %v3848_v41 }
 0x4da   : > { %1799 = vmatprep.mubr.f32.mxu0 %v3845_v26 }
 0x4dd   : > { %1800 = vmatmul.mubr.f32.gmra.mrb[92].mxu0 %v3849_v49 }
 0x4de   : > { %1805 = vmatprep.mubr.f32.mxu0 %v3845_v26 }
 0x4e1   : > { %1806 = vmatmul.mubr.f32.gmra.mrb[94].mxu0 %v3850_v27 }
 0x578   : > { %v1717_v59 = vpop.f32.mrb[64].mxu0 }
 0x579   : > { %2594 = vrcp.f32 %v1717_v59  ;;  %v1719_v48 = vpop.f32.mrb[65].mxu0 }
 0x57a   : > { %2596 = vrcp.f32 %v1719_v48 }
 0x57c   : > { %v1723_v22 = vpop.f32.mrb[66].mxu0 }
 0x57d   : > { %2598 = vrcp.f32 %v1723_v22  ;;  %v1725_v2 = vpop.f32.mrb[67].mxu0 }
 0x57e   : > { %2600 = vrcp.f32 %v1725_v2 }
 0x580   : > { %v1729_v51 = vpop.f32.mrb[68].mxu0 }
 0x581   : > { %2602 = vrcp.f32 %v1729_v51  ;;  %v1731_v57 = vpop.f32.mrb[69].mxu0 }
 0x582   : > { %2604 = vrcp.f32 %v1731_v57 }
 0x583   : > { %v2595_v11 = vpop.eup %2594 }
 0x584   : > { %v2597_v32 = vpop.eup %2596  ;;  %v1735_v1 = vpop.f32.mrb[70].mxu0  ;;  %v1876_v38 = vmul.f32 %v2595_v11, %v3608_v53 }
 0x585   : > { %2606 = vrcp.f32 %v1735_v1  ;;  %v1737_v55 = vpop.f32.mrb[71].mxu0  ;;  %v1877_v7 = vmul.f32 %v2597_v32, %v3600_v44 }
 0x586   : > { %2608 = vrcp.f32 %v1737_v55  ;;  %v1908_v30 = vmul.f32 0.17677669, %v1876_v38 }
 0x587   : > { %v2599_v40 = vpop.eup %2598  ;;  %v1909_v56 = vmul.f32 0.17677669, %v1877_v7 }
 0x588   : > { %v2601_v14 = vpop.eup %2600  ;;  %v1741_v19 = vpop.f32.mrb[72].mxu0  ;;  %v1878_v6 = vmul.f32 %v2599_v40, %v3616_v43 }
 0x589   : > { %2610 = vrcp.f32 %v1741_v19  ;;  %v1743_v61 = vpop.f32.mrb[73].mxu0  ;;  %v1879_v16 = vmul.f32 %v2601_v14, %v3602_v12 }
 0x58a   : > { %2612 = vrcp.f32 %v1743_v61  ;;  %v1910_v39 = vmul.f32 0.17677669, %v1878_v6 }
 0x58b   : > { %v2603_v18 = vpop.eup %2602  ;;  %v1911_v21 = vmul.f32 0.17677669, %v1879_v16 }
 0x58c   : > { %v2605_v17 = vpop.eup %2604  ;;  %v1747_v26 = vpop.f32.mrb[74].mxu0  ;;  %v2353_v53 = vpack.c.bf16 %v1910_v39, %v1908_v30  ;;  %v1880_v35 = vmul.f32 %v2603_v18, %v3624_v34 }
 0x58d   : > { %2614 = vrcp.f32 %v1747_v26  ;;  %v1749_v62 = vpop.f32.mrb[75].mxu0  ;;  %v2351_v44 = vpack.c.bf16 %v1911_v21, %v1909_v56  ;;  %v1881_v41 = vmul.f32 %v2605_v17, %v3618_v47 }
 0x58e   : > { %2616 = vrcp.f32 %v1749_v62  ;;  %v1912_v59 = vmul.f32 0.17677669, %v1880_v35 }
 0x58f   : > { %v2607_v43 = vpop.eup %2606  ;;  %2352 = vmatprep.subr.bf16.mxu1 %v2351_v44  ;;  %v1913_v2 = vmul.f32 0.17677669, %v1881_v41 }
 0x590   : > { %v2609_v12 = vpop.eup %2608  ;;  %v1753_v49 = vpop.f32.mrb[76].mxu0  ;;  %2354 = vmatpush1.bf16.msra.mxu1 %v2353_v53  ;;  %v1882_v27 = vmul.f32 %v2607_v43, %v3628_v37 }
 0x591   : > { %2618 = vrcp.f32 %v1753_v49  ;;  %v1755_v24 = vpop.f32.mrb[77].mxu0  ;;  %v1883_v46 = vmul.f32 %v2609_v12, %v3622_v31 }
 0x592   : > { %2620 = vrcp.f32 %v1755_v24  ;;  %v1914_v48 = vmul.f32 0.17677669, %v1882_v27 }
 0x593   : > { %v2611_v22 = vpop.eup %2610  ;;  %v1915_v51 = vmul.f32 0.17677669, %v1883_v46 }
 0x594   : > { %v2613_v34 = vpop.eup %2612  ;;  %v1759_v57 = vpop.f32.mrb[78].mxu0  ;;  %v2357_v11 = vpack.c.bf16 %v1914_v48, %v1912_v59  ;;  %v1884_v1 = vmul.f32 %v2611_v22, %v3636_v36 }
 0x595   : > { %2622 = vrcp.f32 %v1759_v57  ;;  %v1761_v47 = vpop.f32.mrb[79].mxu0  ;;  %v2355_v32 = vpack.c.bf16 %v1915_v51, %v1913_v2  ;;  %v1885_v55 = vmul.f32 %v2613_v34, %v3630_v63 }
 0x596   : > { %2624 = vrcp.f32 %v1761_v47  ;;  %v1916_v19 = vmul.f32 0.17677669, %v1884_v1 }
 0x597   : > { %v2615_v37 = vpop.eup %2614  ;;  %2356 = vmatprep.subr.bf16.mxu1 %v2355_v32  ;;  %v1917_v16 = vmul.f32 0.17677669, %v1885_v55 }
 0x598   : > { %v2617_v31 = vpop.eup %2616  ;;  %v1765_v38 = vpop.f32.mrb[80].mxu0  ;;  %2358 = vmatpush1.bf16.msra.mxu1 %v2357_v11  ;;  %v1886_v40 = vmul.f32 %v2615_v37, %v3640_v33 }
 0x599   : > { %2626 = vrcp.f32 %v1765_v38  ;;  %v1767_v7 = vpop.f32.mrb[81].mxu0  ;;  %v1887_v14 = vmul.f32 %v2617_v31, %v3634_v58 }
 0x59a   : > { %2628 = vrcp.f32 %v1767_v7  ;;  %v1918_v6 = vmul.f32 0.17677669, %v1886_v40 }
 0x59b   : > { %v2619_v61 = vpop.eup %2618  ;;  %v1919_v30 = vmul.f32 0.17677669, %v1887_v14 }
 0x59c   : > { %v2621_v36 = vpop.eup %2620  ;;  %v1771_v39 = vpop.f32.mrb[82].mxu0  ;;  %v2361_v18 = vpack.c.bf16 %v1918_v6, %v1916_v19  ;;  %v1888_v21 = vmul.f32 %v2619_v61, %v3648_v42 }
 0x59d   : > { %2630 = vrcp.f32 %v1771_v39  ;;  %v1773_v63 = vpop.f32.mrb[83].mxu0  ;;  %v2359_v56 = vpack.c.bf16 %v1919_v30, %v1917_v16  ;;  %v1889_v17 = vmul.f32 %v2621_v36, %v3642_v23 }
 0x59e   : > { %2632 = vrcp.f32 %v1773_v63  ;;  %v1920_v35 = vmul.f32 0.17677669, %v1888_v21 }
 0x59f   : > { %v2623_v33 = vpop.eup %2622  ;;  %2360 = vmatprep.subr.bf16.mxu1 %v2359_v56  ;;  %v1921_v12 = vmul.f32 0.17677669, %v1889_v17 }
 0x5a0   : > { %v2625_v58 = vpop.eup %2624  ;;  %v1777_v26 = vpop.f32.mrb[84].mxu0  ;;  %2362 = vmatpush1.bf16.msra.mxu1 %v2361_v18  ;;  %v1890_v53 = vmul.f32 %v2623_v33, %v3652_v50 }
 0x5a1   : > { %2634 = vrcp.f32 %v1777_v26  ;;  %v1779_v62 = vpop.f32.mrb[85].mxu0  ;;  %v1891_v44 = vmul.f32 %v2625_v58, %v3646_v15 }
 0x5a2   : > { %2636 = vrcp.f32 %v1779_v62  ;;  %v1922_v43 = vmul.f32 0.17677669, %v1890_v53 }
 0x5a3   : > { %v2627_v41 = vpop.eup %2626  ;;  %v1923_v49 = vmul.f32 0.17677669, %v1891_v44 }
 0x5a4   : > { %v2629_v42 = vpop.eup %2628  ;;  %v1783_v27 = vpop.f32.mrb[86].mxu0  ;;  %v2365_v24 = vpack.c.bf16 %v1922_v43, %v1920_v35  ;;  %v1892_v59 = vmul.f32 %v2627_v41, %v3660_v13 }
 0x5a5   : > { %2638 = vrcp.f32 %v1783_v27  ;;  %v1785_v23 = vpop.f32.mrb[87].mxu0  ;;  %v2363_v46 = vpack.c.bf16 %v1923_v49, %v1921_v12  ;;  %v1893_v48 = vmul.f32 %v2629_v42, %v3654_v8 }
 0x5a6   : > { %2640 = vrcp.f32 %v1785_v23  ;;  %v1924_v57 = vmul.f32 0.17677669, %v1892_v59 }
 0x5a7   : > { %v2631_v50 = vpop.eup %2630  ;;  %2364 = vmatprep.subr.bf16.mxu1 %v2363_v46  ;;  %v1925_v32 = vmul.f32 0.17677669, %v1893_v48  ;;  %v3851_v48 = vld [vmem:[#allocation10_spill] sm:$0xff] }
 0x5a8   : > { %v2633_v15 = vpop.eup %2632  ;;  %v1789_v22 = vpop.f32.mrb[88].mxu0  ;;  %2366 = vmatpush1.bf16.msra.mxu1 %v2365_v24  ;;  %v1894_v2 = vmul.f32 %v2631_v50, %v3664_v9 }
 0x5a9   : > { %2642 = vrcp.f32 %v1789_v22  ;;  %v1791_v51 = vpop.f32.mrb[89].mxu0  ;;  %v1895_v34 = vmul.f32 %v2633_v15, %v3658_v4 }
 0x5aa   : > { %2644 = vrcp.f32 %v1791_v51  ;;  %v1926_v11 = vmul.f32 0.17677669, %v1894_v2 }
 0x5ab   : > { %v2635_v47 = vpop.eup %2634  ;;  %v1927_v1 = vmul.f32 0.17677669, %v1895_v34 }
 0x5ac   : > { %v2637_v13 = vpop.eup %2636  ;;  %v1795_v37 = vpop.f32.mrb[90].mxu0  ;;  %v2369_v55 = vpack.c.bf16 %v1926_v11, %v1924_v57  ;;  %v1896_v38 = vmul.f32 %v2635_v47, %v3672_v0  ;;  %v2057_v57 = vld [vmem:[%s3827_s7] sm:$0xff] }
 0x5ad   : > { %2646 = vrcp.f32 %v1795_v37  ;;  %v1797_v8 = vpop.f32.mrb[91].mxu0  ;;  %v2367_v31 = vpack.c.bf16 %v1927_v1, %v1925_v32  ;;  %v1897_v40 = vmul.f32 %v2637_v13, %v3666_v25  ;;  %v2065_v11 = vld [vmem:[%s3828_s8] sm:$0xff] }
 0x5ae   : > { %2648 = vrcp.f32 %v1797_v8  ;;  %v1928_v61 = vmul.f32 0.17677669, %v1896_v38 }
 0x5af   : > { %v2639_v9 = vpop.eup %2638  ;;  %2368 = vmatprep.subr.bf16.mxu1 %v2367_v31  ;;  %v1929_v36 = vmul.f32 0.17677669, %v1897_v40 }
 0x5b0   : > { %v2641_v4 = vpop.eup %2640  ;;  %v1801_v7 = vpop.f32.mrb[92].mxu0  ;;  %2370 = vmatpush1.bf16.msra.mxu1 %v2369_v55  ;;  %v1898_v14 = vmul.f32 %v2639_v9, %v3676_v60 }
 0x5b1   : > { %2650 = vrcp.f32 %v1801_v7  ;;  %v1803_v19 = vpop.f32.mrb[93].mxu0  ;;  %v1899_v6 = vmul.f32 %v2641_v4, %v3670_v20 }
 0x5b2   : > { %2652 = vrcp.f32 %v1803_v19  ;;  %v1930_v16 = vmul.f32 0.17677669, %v1898_v14 }
 0x5b3   : > { %v2643_v30 = vpop.eup %2642  ;;  %v1931_v39 = vmul.f32 0.17677669, %v1899_v6 }
 0x5b4   : > { %v2645_v0 = vpop.eup %2644  ;;  %v1807_v18 = vpop.f32.mrb[94].mxu0  ;;  %v2373_v63 = vpack.c.bf16 %v1930_v16, %v1928_v61  ;;  %v1900_v21 = vmul.f32 %v2643_v30, %v3684_v28 }
 0x5b5   : > { %2654 = vrcp.f32 %v1807_v18  ;;  %v1809_v25 = vpop.f32.mrb[95].mxu0  ;;  %v2371_v56 = vpack.c.bf16 %v1931_v39, %v1929_v36  ;;  %v1901_v33 = vmul.f32 %v2645_v0, %v3678_v3 }
 0x5b6   : > { %2656 = vrcp.f32 %v1809_v25  ;;  %v1932_v26 = vmul.f32 0.17677669, %v1900_v21 }
 0x5b7   : > { %v2647_v60 = vpop.eup %2646  ;;  %2372 = vmatprep.subr.bf16.mxu1 %v2371_v56  ;;  %v1933_v44 = vmul.f32 0.17677669, %v1901_v33 }
 0x5b8   : > { %v2649_v20 = vpop.eup %2648  ;;  %2374 = vmatpush1.bf16.msra.mxu1 %v2373_v63  ;;  %v1902_v17 = vmul.f32 %v2647_v60, %v3688_v29 }
 0x5b9   : > { %v1903_v58 = vmul.f32 %v2649_v20, %v3682_v54 }
 0x5ba   : > { %v1934_v53 = vmul.f32 0.17677669, %v1902_v17 }
 0x5bb   : > { %v2651_v62 = vpop.eup %2650  ;;  %v1935_v35 = vmul.f32 0.17677669, %v1903_v58 }
 0x5bc   : > { %v2653_v43 = vpop.eup %2652  ;;  %v2377_v41 = vpack.c.bf16 %v1934_v53, %v1932_v26  ;;  %v1904_v28 = vmul.f32 %v2651_v62, %v3694_v10  ;;  %v1944_v10 = vpop.permute.xlu0 %1943 }
 0x5bd   : > { %v2375_v12 = vpack.c.bf16 %v1935_v35, %v1933_v44  ;;  %v1905_v3 = vmul.f32 %v2653_v43, %v3690_v52 }
 0x5be   : > { %v1936_v27 = vmul.f32 0.17677669, %v1904_v28 }
 0x5bf   : > { %v2655_v49 = vpop.eup %2654  ;;  %2376 = vmatprep.subr.bf16.mxu1 %v2375_v12  ;;  %v1937_v23 = vmul.f32 0.17677669, %v1905_v3 }
 0x5c0   : > { %v2657_v42 = vpop.eup %2656  ;;  %2378 = vmatpush1.bf16.msra.mxu1 %v2377_v41  ;;  %v1906_v29 = vmul.f32 %v2655_v49, %v3588_v45 }
 0x5c1   : > { %v1907_v54 = vmul.f32 %v2657_v42, %v3596_v5 }
 0x5c2   : > { %v1938_v24 = vmul.f32 0.17677669, %v1906_v29 }
 0x5c3   : > { %v1939_v46 = vmul.f32 0.17677669, %v1907_v54 }
 0x5c4   : > { %v2381_v59 = vpack.c.bf16 %v1938_v24, %v1936_v27 }
 0x5c5   : > { %v2379_v50 = vpack.c.bf16 %v1939_v46, %v1937_v23 }
 0x5c7   : > { %2380 = vmatprep.subr.bf16.mxu1 %v2379_v50 }
 0x5c8   : > { %2382 = vmatpush1.bf16.msra.mxu1 %v2381_v59 }
 0x5cb   : > { %2011 = vmatmul.mubr.f32.vlgmr.msra.gmra.mrb[66].mxu1 %v3851_v48 }
 0x69e   : > { %v2012_v15 = vpop.f32.mrb[66].mxu1 }
 0x69f   : > { %v2013_v22 = vadd.f32 %v2012_v15, %v1944_v10  ;;  %v2014_v52 = vpop.f32.mrb[67].mxu1 }
 0x6a0   : > { %v2015_v2 = vadd.f32 %v2014_v52, %v1944_v10 }
 0x6a1   : > { %v2027_v34 = vmul.f32 %v2013_v22, %v2013_v22 }
 0x6a2   : > { %v2017_v51 = vadd.f32 %v2015_v2, %v2013_v22  ;;  %v2028_v45 = vmul.f32 %v2015_v2, %v2015_v2 }
 0x6a4   : > { %2018 = vadd.xlane.f32.xlu1 %v2017_v51  ;;  %v2029_v5 = vadd.f32 %v2028_v45, %v2027_v34 }
 0x6a8   : > { %2030 = vadd.xlane.f32.xlu1 %v2029_v5 }
 0x6b9   : > { %2060 = vperm.xlu1 %2433, %v2057_v57  }
 0x6bd   : > { %2068 = vperm.xlu1 %2433, %v2065_v11  }
 0x731   : > { %v2019_v47 = vpop.xlane.xlu1 %2018 }
 0x732   : > { %v2020_v32 = vrot.slane %v2019_v47, 4 }
 0x734   : > { %v2021_v1 = vadd.f32 %v2020_v32, %v2019_v47 }
 0x735   : > { %v2031_v13 = vpop.xlane.xlu1 %2030 }
 0x736   : > { %v2022_v37 = vrot.slane %v2021_v1, 2  ;;  %v2032_v55 = vrot.slane %v2031_v13, 4 }
 0x738   : > { %v2033_v8 = vadd.f32 %v2032_v55, %v2031_v13  ;;  %v2023_v31 = vadd.f32 %v2022_v37, %v2021_v1 }
 0x739   : > { %v2061_v16 = vpop.permute.xlu1 %2060 }
 0x73a   : > { %v2034_v38 = vrot.slane %v2033_v8, 2  ;;  %v2024_v9 = vrot.slane %v2023_v31, 1 }
 0x73c   : > { %v2025_v40 = vadd.f32 %v2024_v9, %v2023_v31  ;;  %v2035_v4 = vadd.f32 %v2034_v38, %v2033_v8 }
 0x73d   : > { %v2069_v56 = vpop.permute.xlu1 %2068 }
 0x73e   : > { %2383 = vpush %v2025_v40  ;;  %v2036_v7 = vrot.slane %v2035_v4, 1 }
 0x740   : > { %v2037_v14 = vadd.f32 %v2036_v7, %v2035_v4 }
 0x742   : > { %2385 = vpush %v2037_v14 }
 0x76f   : > { %s2384_s27 = spop %2383 }
 0x770   : > { %s2041_s28 = smul.f32 0.00048828125, %s2384_s27  ;;  %s2090_s27 = sshll.u32 %s325_s26, 4  ;;  %s3780_s27 = int_to_ptr.vmem [resolvable:$true] %s2090_s27 }
 0x772   : > { %s2045_s25 = smul.f32 %s2041_s28, %s2041_s28  ;;  %v2047_v61 = vstv %s2041_s28  ;;  %s3778_s28 = scalar_lea.hbm %s3829_s9, %s2210_s24 }
 0x773   : > { %s2386_s29 = spop %2385  ;;  %v2048_v30 = vsub.f32 %v2013_v22, %v2047_v61  ;;  %v2049_v36 = vsub.f32 %v2015_v2, %v2047_v61 }
 0x774   : > { %s2044_s14 = smul.f32 0.00048828125, %s2386_s29 }
 0x776   : > { %s2046_s16 = ssub.f32 %s2044_s14, %s2045_s25  ;;  %s2662_s14 = scalar_lea.vmem %s3780_s27, 256 }
 0x777   : > { %p2663_p11 = scmp.ne.s32.totalorder %s3780_s27, %s2662_s14 }
 0x778   : > { %s2050_s17 = sadd.f32 1e-05, %s2046_s16  ;;  %s2730_s16 = smov [#allocation2]  }
 0x779   : > { %p2664_p12 = pnand %p2663_p11, %p2819_p5 }
 0x77a   : > { %v2051_v19 = vstv %s2050_s17  ;;  %s2666_s17 = sshll.u32 %s2730_s16, 4  ;;  %s2667_s17 = int_to_ptr.vmem [resolvable:$false] %s2666_s17 }
 0x77b   : > { %2658 = vrsqrt.f32 %v2051_v19  ;;  %p2665_p13 = pneg %p2664_p12  ;;  %s2668_s22 = scalar_lea.vmem %s2667_s17, 512 }
 0x77c   : > { %p2669_p0 = scmp.lt.s32.totalorder %s3780_s27, %s2667_s17  ;;  %p2670_p1 = scmp.lt.s32.totalorder %s2668_s22, %s2662_s14 }
 0x77e   : > { %p2671_p2 = por %p2670_p1, %p2669_p0 }
 0x780   : > { %p2672_p3 = pnand %p2671_p2, %p2665_p13 }
 0x785   : > { %v2659_v6 = vpop.eup %2658 }
 0x786   : > { %2387 = vpush %v2659_v6 }
 0x7b7   : > { %s2388_s23 = spop %2387 }
 0x7b8   : > { %v2054_v39 = vstv %s2388_s23 }
 0x7b9   : > { %v2055_v0 = vmul.f32 %v2054_v39, %v2048_v30  ;;  %v2056_v18 = vmul.f32 %v2054_v39, %v2049_v36 }
 0x7bb   : > { %v2063_v63 = vmul.f32 %v2061_v16, %v2055_v0  ;;  %v2064_v25 = vmul.f32 %v2061_v16, %v2056_v18 }
 0x7bd   : > { %v2071_v21 = vadd.f32 %v2069_v56, %v2063_v63  ;;  %v2072_v60 = vadd.f32 %v2069_v56, %v2064_v25 }
 0x7bf   : > { %2073 = vst [vmem:[%s325_s26] sm:$0xff] %v2071_v21  ;;  %2074 = vst [vmem:[%s325_s26 + $0x8] sm:$0xff] %v2072_v60 }
 0x7c0   : > { %2675 = shalt.err (!%p2672_p3)
}
 0x7c1   : > { %s2676_s21 = scalar_lea.hbm %s3778_s28, 256  ;;  %s2680_s26 = scalar_lea.hbm %s3829_s9, 512 }
 0x7c2   : > { %p2677_p4 = scmp.ne.s32.totalorder %s3778_s28, %s2676_s21  ;;  %p2681_p9 = scmp.lt.u32.totalorder %s3778_s28, %s3829_s9 }
 0x7c3   : > { %p2682_p10 = scmp.lt.u32.totalorder %s2680_s26, %s2676_s21  ;;  %p2684_p12 = scmp.lt.u32.totalorder %s2676_s21, %s3778_s28 }
 0x7c4   : > { %p2678_p7 = pnand %p2677_p4, %p2819_p5 }
 0x7c5   : > { %p2683_p11 = por %p2682_p10, %p2681_p9 }
 0x7c6   : > { %p2679_p8 = pneg %p2678_p7 }
 0x7c7   : > { %p2685_p13 = por %p2684_p12, %p2683_p11 }
 0x7c9   : > { %p2686_p0 = pnand %p2685_p13, %p2679_p8 }
 0x7cb   : > { %2689 = shalt.err (!%p2686_p0)
}
 0x7cc   : > { %2389 = dma.vmem_to_hbm [thread:$0]  (%p2819_p5), %s3780_s27, 256, %s3778_s28, %s2076_s13  }
 0x7cd PF: > { %p2395_p1 = scmp.ge.s32.totalorder %s2724_s12, 2  ;;  %s2102_s14 = sand.u32 1, %s2712_s30  }
 0x7ce   : > { %s2103_s16 = scalar_lea.sflag [#allocation3], %s2102_s14 }
 0x7cf   : > { %p2392_p2 = pnand %p2395_p1, %p2823_p6 }
 0x7d1   : > { %2707 = dma.done.wait (!%p2392_p2), %s2103_s16, 256  }
 0x7d2   : > { %2709 = vsyncadd (!%p2392_p2), %s2103_s16, 4294967040  ;;  %p19_p3 = scmp.ge.s32.totalorder %s2806_s15, 4   ;;  %s3852_s30 = smov %s2716_s10 }
 0x7d3   : > { %s3853_s10 = smov %s2720_s11  ;;  %s3854_s11 = smov %s2817_s18 }
 0x7d4   : > { %s3855_s12 = smov %s2806_s15  ;;  %21 = sbr.rel (!%p19_p3) target bundleno = 3 (0x3), region = 91 }
 0x7db   :  { %2108 = vsyncpa [#allocation3], 1 }
 0x7dc   :  { %2110 = vsyncpa [#allocation3 + $0x1], 1 }

</bundles_post_ra>
